<compile_context>
chip_gen: v5e
topology: v5e:2x2
jax: 0.10.0
libtpu: 0.0.40
codegen_flags: <defaults>
</compile_context>

<pallas_src>
import jax
import jax.numpy as jnp
from jax.experimental import pallas as pl
from jax.experimental.pallas import tpu as pltpu


def _silu(x):
    return x * jax.nn.sigmoid(x)


def _round_up(x, m):
    return ((x + m - 1) // m) * m


# ---------------------------------------------------------------------------
# Edge model kernel (one E-tile per grid step)
# ---------------------------------------------------------------------------
def _edge_kernel(xin_ref, emask_ref, w1_ref, b1_ref, w2_ref, b2_ref,
                 wa_ref, ba_ref, out_ref):
    # fused layer 1: cat([src, tgt, e_attr]) @ W1  (inputs pre-packed in wrapper)
    x = xin_ref[...].astype(w1_ref.dtype)
    pre1 = jnp.dot(x, w1_ref[...], preferred_element_type=jnp.float32) + b1_ref[...]
    h1 = _silu(pre1)
    # layer 2
    pre2 = (jnp.dot(h1.astype(w2_ref.dtype), w2_ref[...],
                    preferred_element_type=jnp.float32) + b2_ref[...])
    mij = _silu(pre2)
    # attention gate: (E,1) matmul replaced by VPU multiply + lane reduction
    att = jax.nn.sigmoid(
        jnp.sum(mij * wa_ref[...], axis=-1, keepdims=True) + ba_ref[...])
    efeat = mij * att * emask_ref[...]
    # single lane-dense store of the packed [mij | efeat] block
    out_ref[...] = jnp.concatenate([mij, efeat], axis=-1)


# ---------------------------------------------------------------------------
# Node model kernel (segment-sum accumulated over E-tiles, MLP at last step)
# ---------------------------------------------------------------------------
def _node_kernel(h_ref, packed_ref, row_ref, nmask_ref,
                 w1h_ref, w1a_ref, b1_ref, w2_ref, b2_ref,
                 out_ref, agg_ref):
    k = pl.program_id(0)
    H = agg_ref.shape[1]
    N = h_ref.shape[0]
    TE = packed_ref.shape[0]

    @pl.when(k == 0)
    def _():
        agg_ref[...] = jnp.zeros_like(agg_ref)

    # unsorted_segment_sum of this E-tile: one-hot[N,TE] @ efeat[TE,H].
    # one-hot is exact in bf16; accumulate in f32 scratch.  Padded edges were
    # given edge_mask = 0, so their (zero) features cannot pollute the sum.
    efeat = packed_ref[:, H:].astype(jnp.bfloat16)
    node_idx = jax.lax.broadcasted_iota(jnp.int32, (N, TE), 0)
    onehot = (node_idx == row_ref[...]).astype(jnp.bfloat16)
    agg_ref[...] += jnp.dot(onehot, efeat, preferred_element_type=jnp.float32)

    @pl.when(k == pl.num_programs(0) - 1)
    def _():
        h = h_ref[...]
        # node layer 1: cat([h, agg]) @ W1 == h@W1h + agg@(W1a/norm)
        pre1 = (jnp.dot(h.astype(w1h_ref.dtype), w1h_ref[...],
                        preferred_element_type=jnp.float32)
                + jnp.dot(agg_ref[...].astype(w1a_ref.dtype), w1a_ref[...],
                          preferred_element_type=jnp.float32)
                + b1_ref[...])
        h1 = _silu(pre1)
        pre2 = (jnp.dot(h1.astype(w2_ref.dtype), w2_ref[...],
                        preferred_element_type=jnp.float32) + b2_ref[...])
        out_ref[...] = (h + pre2) * nmask_ref[...]


# ---------------------------------------------------------------------------
# Python wrapper: GCL forward
# ---------------------------------------------------------------------------
def gcl_forward(params, h, edge_index, edge_attr, node_mask, edge_mask,
                normalization_factor=100.0, tile_e=512,
                mlp_matmul_dtype=jnp.float32):
    """Returns (h_out, mij), matching GCL.forward."""
    N, input_nf = h.shape
    E = edge_index.shape[1]
    hidden_nf = params["edge_w2"].shape[0]
    output_nf = params["node_w2"].shape[1]
    assert output_nf == input_nf, "residual in node_model requires output_nf == input_nf"

    row = edge_index[0].astype(jnp.int32)
    col = edge_index[1].astype(jnp.int32)

    # TODO(synk): fuse the h[row]/h[col] gather into the edge kernel (scalar
    # prefetch of row/col + in-kernel gather) to avoid materializing (E, 2*nf)
    # in HBM; kept in the wrapper here for lowering robustness.
    edge_in = jnp.concatenate(
        [h[row], h[col], edge_attr], axis=1).astype(mlp_matmul_dtype)
    k1 = edge_in.shape[1]

    # E tiling: tile must be a multiple of 128 (lane width) unless it equals
    # the padded extent; pad the remainder tile with masked (edge_mask = 0) rows.
    tile_e = max(128, min(int(tile_e), _round_up(E, 128)))
    tile_e = _round_up(tile_e, 128)
    e_pad = _round_up(E, tile_e)
    pad = e_pad - E
    edge_mask_f = edge_mask.astype(jnp.float32)
    if pad:
        edge_in = jnp.pad(edge_in, ((0, pad), (0, 0)))
        edge_mask_f = jnp.pad(edge_mask_f, ((0, pad), (0, 0)))
        row_p = jnp.pad(row, (0, pad))          # padded rows -> segment 0 (zero feat)
    else:
        row_p = row
    n_tiles = e_pad // tile_e

    # Weights: MLP weights cast to the MXU-feeding dtype, attention row stays
    # f32 (it rides the VPU).  1/normalization_factor folded into W1_agg.
    w1_e = params["edge_w1"].astype(mlp_matmul_dtype)
    w2_e = params["edge_w2"].astype(mlp_matmul_dtype)
    wa_row = params["att_w"].T.astype(jnp.float32)            # (1, hidden)
    w1h_n = params["node_w1"][:input_nf].astype(mlp_matmul_dtype)
    w1a_n = (params["node_w1"][input_nf:] /
             float(normalization_factor)).astype(mlp_matmul_dtype)
    w2_n = params["node_w2"].astype(mlp_matmul_dtype)

    cparams_edge = pltpu.CompilerParams(
        dimension_semantics=("parallel",),
        vmem_limit_bytes=32 * 1024 * 1024)
    cparams_node = pltpu.CompilerParams(
        dimension_semantics=("arbitrary",),
        vmem_limit_bytes=32 * 1024 * 1024)

    # ---- edge kernel: packed [mij | efeat] output, (E_pad, 2*hidden) ----
    packed = pl.pallas_call(
        _edge_kernel,
        out_shape=jax.ShapeDtypeStruct((e_pad, 2 * hidden_nf), jnp.float32),
        grid=(n_tiles,),
        in_specs=[
            pl.BlockSpec((tile_e, k1), lambda i: (i, 0)),          # packed edge input
            pl.BlockSpec((tile_e, 1), lambda i: (i, 0)),           # edge mask
            pl.BlockSpec((k1, hidden_nf), lambda i: (0, 0)),       # W1 (resident)
            pl.BlockSpec((1, hidden_nf), lambda i: (0, 0)),        # b1
            pl.BlockSpec((hidden_nf, hidden_nf), lambda i: (0, 0)),# W2
            pl.BlockSpec((1, hidden_nf), lambda i: (0, 0)),        # b2
            pl.BlockSpec((1, hidden_nf), lambda i: (0, 0)),        # att W (row vec)
            pl.BlockSpec((1, 1), lambda i: (0, 0)),                # att b
        ],
        out_specs=pl.BlockSpec((tile_e, 2 * hidden_nf), lambda i: (i, 0)),
        compiler_params=cparams_edge,
    )(edge_in, edge_mask_f, w1_e, params["edge_b1"], w2_e, params["edge_b2"],
      wa_row, params["att_b"])

    mij = packed[:E, :hidden_nf]

    # ---- node kernel: segment-sum accumulator over E-tiles + node MLP ----
    row_2d = row_p.reshape(1, e_pad)
    h_out = pl.pallas_call(
        _node_kernel,
        out_shape=jax.ShapeDtypeStruct((N, output_nf), jnp.float32),
        grid=(n_tiles,),
        in_specs=[
            pl.BlockSpec((N, input_nf), lambda k: (0, 0)),             # h (resident)
            pl.BlockSpec((tile_e, 2 * hidden_nf), lambda k: (k, 0)),   # packed edge out
            pl.BlockSpec((1, tile_e), lambda k: (0, k)),               # row ids
            pl.BlockSpec((N, 1), lambda k: (0, 0)),                    # node mask
            pl.BlockSpec((input_nf, hidden_nf), lambda k: (0, 0)),     # W1 (h half)
            pl.BlockSpec((hidden_nf, hidden_nf), lambda k: (0, 0)),    # W1 (agg half)
            pl.BlockSpec((1, hidden_nf), lambda k: (0, 0)),            # b1
            pl.BlockSpec((hidden_nf, output_nf), lambda k: (0, 0)),    # W2
            pl.BlockSpec((1, output_nf), lambda k: (0, 0)),            # b2
        ],
        out_specs=pl.BlockSpec((N, output_nf), lambda k: (0, 0)),
        scratch_shapes=[pltpu.VMEM((N, hidden_nf), jnp.float32)],
        compiler_params=cparams_node,
    )(h.astype(jnp.float32), packed, row_2d, node_mask.astype(jnp.float32),
      w1h_n, w1a_n, params["node_b1"], w2_n, params["node_b2"])

    return h_out, mij


# ---------------------------------------------------------------------------
# Deterministic parameter init (PyTorch-style uniform(-1/sqrt(fan_in), +...))
# ---------------------------------------------------------------------------
def init_params(key, input_nf, output_nf, hidden_nf, edges_in_d):
    def lin(k, fan_in, fan_out):
        lim = 1.0 / jnp.sqrt(fan_in)
        kw, kb = jax.random.split(k)
        w = jax.random.uniform(kw, (fan_in, fan_out), jnp.float32, -lim, lim)
        b = jax.random.uniform(kb, (1, fan_out), jnp.float32, -lim, lim)
        return w, b

    keys = jax.random.split(key, 5)
    input_edge = 2 * input_nf + edges_in_d
    ew1, eb1 = lin(keys[0], input_edge, hidden_nf)
    ew2, eb2 = lin(keys[1], hidden_nf, hidden_nf)
    nw1, nb1 = lin(keys[2], hidden_nf + input_nf, hidden_nf)
    nw2, nb2 = lin(keys[3], hidden_nf, output_nf)
    aw, ab = lin(keys[4], hidden_nf, 1)
    return {
        "edge_w1": ew1, "edge_b1": eb1,
        "edge_w2": ew2, "edge_b2": eb2,
        "node_w1": nw1, "node_b1": nb1,
        "node_w2": nw2, "node_b2": nb2,
        "att_w": aw, "att_b": ab,
    }


# ---------------------------------------------------------------------------
# Pure-JAX f32 reference (mirrors the PyTorch forward exactly)
# ---------------------------------------------------------------------------
def gcl_reference(params, h, edge_index, edge_attr, node_mask, edge_mask, norm):
    row, col = edge_index[0], edge_index[1]
    out = jnp.concatenate([h[row], h[col], edge_attr], axis=1)
    mij = _silu(_silu(out @ params["edge_w1"] + params["edge_b1"])
                @ params["edge_w2"] + params["edge_b2"])
    att = jax.nn.sigmoid(mij @ params["att_w"] + params["att_b"])
    edge_feat = mij * att * edge_mask
    agg = jax.ops.segment_sum(edge_feat, row, num_segments=h.shape[0]) / norm
    node_in = jnp.concatenate([h, agg], axis=1)
    out_n = (_silu(node_in @ params["node_w1"] + params["node_b1"])
             @ params["node_w2"] + params["node_b2"])
    return (h + out_n) * node_mask, mij


if __name__ == "__main__":
    input_nf = 16
    output_nf = 16        # residual requires output_nf == input_nf
    hidden_nf = 32
    edges_in_d = 4
    N = 16                # nodes
    E = 300               # edges (not a multiple of the tile -> exercises padding)
    norm = 100.0

    key = jax.random.PRNGKey(0)
    kp, kh, ke, kei, knm, kem = jax.random.split(key, 6)

    params = init_params(kp, input_nf, output_nf, hidden_nf, edges_in_d)

    h = jax.random.normal(kh, (N, input_nf), jnp.float32)
    edge_attr = jax.random.normal(ke, (E, edges_in_d), jnp.float32)
    edge_index = jax.random.randint(kei, (2, E), 0, N, dtype=jnp.int32)
    node_mask = (jax.random.uniform(knm, (N, 1)) > 0.2).astype(jnp.float32)
    edge_mask = (jax.random.uniform(kem, (E, 1)) > 0.2).astype(jnp.float32)

    h_ref, mij_ref = gcl_reference(params, h, edge_index, edge_attr,
                                   node_mask, edge_mask, norm)

    # f32 MLP matmuls (aggregation matmul still bf16-fed, exact one-hot):
    # small tile to exercise the multi-tile grid + accumulator + padding path.
    h_out, mij = gcl_forward(params, h, edge_index, edge_attr,
                             node_mask, edge_mask, norm,
                             tile_e=128, mlp_matmul_dtype=jnp.float32)
    jax.block_until_ready((h_out, mij))
    assert jnp.allclose(h_out, h_ref, atol=2e-3, rtol=2e-3), \
        float(jnp.max(jnp.abs(h_out - h_ref)))
    assert jnp.allclose(mij, mij_ref, atol=2e-3, rtol=2e-3), \
        float(jnp.max(jnp.abs(mij - mij_ref)))

    # bf16-fed MXU path (recommended on v6e/v7x): looser tolerance vs f32 ref.
    h_bf, mij_bf = gcl_forward(params, h, edge_index, edge_attr,
                               node_mask, edge_mask, norm,
                               tile_e=512, mlp_matmul_dtype=jnp.bfloat16)
    jax.block_until_ready((h_bf, mij_bf))
    assert jnp.allclose(h_bf, h_ref, atol=1e-1, rtol=1e-1), \
        float(jnp.max(jnp.abs(h_bf - h_ref)))
    assert jnp.allclose(mij_bf, mij_ref, atol=1e-1, rtol=1e-1), \
        float(jnp.max(jnp.abs(mij_bf - mij_ref)))

    print("KERNEL_OK")
</pallas_src>

<mosaic_0001>
module attributes {stable_mosaic.version = 11 : i64} {
  func.func @_edge_kernel(%arg0: i32, %arg1: memref<128x36xf32, #tpu.memory_space<vmem>>, %arg2: memref<128x1xf32, #tpu.memory_space<vmem>>, %arg3: memref<36x32xf32, #tpu.memory_space<vmem>>, %arg4: memref<1x32xf32, #tpu.memory_space<vmem>>, %arg5: memref<32x32xf32, #tpu.memory_space<vmem>>, %arg6: memref<1x32xf32, #tpu.memory_space<vmem>>, %arg7: memref<1x32xf32, #tpu.memory_space<vmem>>, %arg8: memref<1x1xf32, #tpu.memory_space<vmem>>, %arg9: memref<128x64xf32, #tpu.memory_space<vmem>>) attributes {dimension_semantics = [#tpu.dimension_semantics<parallel>], iteration_bounds = array<i64: 3>, scalar_prefetch = 0 : i64, scratch_operands = 0 : i64, tpu.core_type = #tpu.core_type<tc>, window_params = [{transform_indices = @transform_0, window_bounds = array<i64: 128, 36>}, {transform_indices = @transform_1, window_bounds = array<i64: 128, 1>}, {pipeline_mode = #tpu.pipeline_mode<synchronous>, transform_indices = @transform_2, window_bounds = array<i64: 36, 32>}, {pipeline_mode = #tpu.pipeline_mode<synchronous>, transform_indices = @transform_3, window_bounds = array<i64: 1, 32>}, {pipeline_mode = #tpu.pipeline_mode<synchronous>, transform_indices = @transform_4, window_bounds = array<i64: 32, 32>}, {pipeline_mode = #tpu.pipeline_mode<synchronous>, transform_indices = @transform_5, window_bounds = array<i64: 1, 32>}, {pipeline_mode = #tpu.pipeline_mode<synchronous>, transform_indices = @transform_6, window_bounds = array<i64: 1, 32>}, {pipeline_mode = #tpu.pipeline_mode<synchronous>, transform_indices = @transform_7, window_bounds = array<i64: 1, 1>}, {transform_indices = @transform_8, window_bounds = array<i64: 128, 64>}]} {
    %c0 = arith.constant 0 : index
    %c0_0 = arith.constant 0 : index
    %0 = vector.load %arg1[%c0, %c0_0] : memref<128x36xf32, #tpu.memory_space<vmem>>, vector<128x36xf32>
    %c0_1 = arith.constant 0 : index
    %c0_2 = arith.constant 0 : index
    %1 = vector.load %arg3[%c0_1, %c0_2] : memref<36x32xf32, #tpu.memory_space<vmem>>, vector<36x32xf32>
    %cst = arith.constant dense<0.000000e+00> : vector<128x32xf32>
    %2 = tpu.matmul %0, %1, %cst {dimension_numbers = #tpu.dot_dimension_numbers<[1], [0], [0], [1], [0, 0, 1, 1], [], []>} : vector<128x36xf32>, vector<36x32xf32>, vector<128x32xf32> -> vector<128x32xf32>
    %c0_3 = arith.constant 0 : index
    %c0_4 = arith.constant 0 : index
    %3 = vector.load %arg4[%c0_3, %c0_4] : memref<1x32xf32, #tpu.memory_space<vmem>>, vector<1x32xf32>
    %4 = vector.broadcast %3 : vector<1x32xf32> to vector<128x32xf32>
    %5 = arith.addf %2, %4 : vector<128x32xf32>
    %6 = arith.negf %5 : vector<128x32xf32>
    %7 = math.exp %6 : vector<128x32xf32>
    %cst_5 = arith.constant 1.000000e+00 : f32
    %8 = vector.broadcast %cst_5 : f32 to vector<128x32xf32>
    %9 = arith.addf %8, %7 : vector<128x32xf32>
    %10 = arith.divf %8, %9 : vector<128x32xf32>
    %11 = arith.mulf %5, %10 : vector<128x32xf32>
    %c0_6 = arith.constant 0 : index
    %c0_7 = arith.constant 0 : index
    %12 = vector.load %arg5[%c0_6, %c0_7] : memref<32x32xf32, #tpu.memory_space<vmem>>, vector<32x32xf32>
    %cst_8 = arith.constant dense<0.000000e+00> : vector<128x32xf32>
    %13 = tpu.matmul %11, %12, %cst_8 {dimension_numbers = #tpu.dot_dimension_numbers<[1], [0], [0], [1], [0, 0, 1, 1], [], []>} : vector<128x32xf32>, vector<32x32xf32>, vector<128x32xf32> -> vector<128x32xf32>
    %c0_9 = arith.constant 0 : index
    %c0_10 = arith.constant 0 : index
    %14 = vector.load %arg6[%c0_9, %c0_10] : memref<1x32xf32, #tpu.memory_space<vmem>>, vector<1x32xf32>
    %15 = vector.broadcast %14 : vector<1x32xf32> to vector<128x32xf32>
    %16 = arith.addf %13, %15 : vector<128x32xf32>
    %17 = arith.negf %16 : vector<128x32xf32>
    %18 = math.exp %17 : vector<128x32xf32>
    %cst_11 = arith.constant 1.000000e+00 : f32
    %19 = vector.broadcast %cst_11 : f32 to vector<128x32xf32>
    %20 = arith.addf %19, %18 : vector<128x32xf32>
    %21 = arith.divf %19, %20 : vector<128x32xf32>
    %22 = arith.mulf %16, %21 : vector<128x32xf32>
    %c0_12 = arith.constant 0 : index
    %c0_13 = arith.constant 0 : index
    %23 = vector.load %arg7[%c0_12, %c0_13] : memref<1x32xf32, #tpu.memory_space<vmem>>, vector<1x32xf32>
    %24 = vector.broadcast %23 : vector<1x32xf32> to vector<128x32xf32>
    %25 = arith.mulf %22, %24 : vector<128x32xf32>
    %cst_14 = arith.constant dense<0.000000e+00> : vector<128xf32>
    %26 = vector.multi_reduction <add>, %25, %cst_14 [1] : vector<128x32xf32> to vector<128xf32>
    %27 = vector.shape_cast %26 : vector<128xf32> to vector<128x1xf32>
    %c0_15 = arith.constant 0 : index
    %c0_16 = arith.constant 0 : index
    %28 = vector.load %arg8[%c0_15, %c0_16] : memref<1x1xf32, #tpu.memory_space<vmem>>, vector<1x1xf32>
    %29 = vector.broadcast %28 : vector<1x1xf32> to vector<128x1xf32>
    %30 = arith.addf %27, %29 : vector<128x1xf32>
    %31 = arith.negf %30 : vector<128x1xf32>
    %32 = math.exp %31 : vector<128x1xf32>
    %cst_17 = arith.constant 1.000000e+00 : f32
    %33 = vector.broadcast %cst_17 : f32 to vector<128x1xf32>
    %34 = arith.addf %33, %32 : vector<128x1xf32>
    %35 = arith.divf %33, %34 : vector<128x1xf32>
    %36 = vector.broadcast %35 : vector<128x1xf32> to vector<128x32xf32>
    %37 = arith.mulf %22, %36 : vector<128x32xf32>
    %c0_18 = arith.constant 0 : index
    %c0_19 = arith.constant 0 : index
    %38 = vector.load %arg2[%c0_18, %c0_19] : memref<128x1xf32, #tpu.memory_space<vmem>>, vector<128x1xf32>
    %39 = vector.broadcast %38 : vector<128x1xf32> to vector<128x32xf32>
    %40 = arith.mulf %37, %39 : vector<128x32xf32>
    %41 = tpu.concatenate %22, %40 in 1 : vector<128x32xf32>, vector<128x32xf32> -> vector<128x64xf32>
    %c0_20 = arith.constant 0 : index
    %c0_21 = arith.constant 0 : index
    %42 = vector.load %arg9[%c0_20, %c0_21] : memref<128x64xf32, #tpu.memory_space<vmem>>, vector<128x64xf32>
    tpu.vector_store %arg9[%c0_20, %c0_21], %41 {strides = array<i32>} : memref<128x64xf32, #tpu.memory_space<vmem>>, vector<128x64xf32>,
    return
  }
  func.func @transform_0(%arg0: i32) -> (i32, i32) {
    %c0_i32 = arith.constant 0 : i32
    %c0_i32_0 = arith.constant 0 : i32
    return %arg0, %c0_i32 : i32, i32
  }
  func.func @transform_1(%arg0: i32) -> (i32, i32) {
    %c0_i32 = arith.constant 0 : i32
    %c0_i32_0 = arith.constant 0 : i32
    return %arg0, %c0_i32 : i32, i32
  }
  func.func @transform_2(%arg0: i32) -> (i32, i32) {
    %c0_i32 = arith.constant 0 : i32
    %c0_i32_0 = arith.constant 0 : i32
    %c0_i32_1 = arith.constant 0 : i32
    return %c0_i32, %c0_i32_0 : i32, i32
  }
  func.func @transform_3(%arg0: i32) -> (i32, i32) {
    %c0_i32 = arith.constant 0 : i32
    %c0_i32_0 = arith.constant 0 : i32
    %c0_i32_1 = arith.constant 0 : i32
    return %c0_i32, %c0_i32_0 : i32, i32
  }
  func.func @transform_4(%arg0: i32) -> (i32, i32) {
    %c0_i32 = arith.constant 0 : i32
    %c0_i32_0 = arith.constant 0 : i32
    %c0_i32_1 = arith.constant 0 : i32
    return %c0_i32, %c0_i32_0 : i32, i32
  }
  func.func @transform_5(%arg0: i32) -> (i32, i32) {
    %c0_i32 = arith.constant 0 : i32
    %c0_i32_0 = arith.constant 0 : i32
    %c0_i32_1 = arith.constant 0 : i32
    return %c0_i32, %c0_i32_0 : i32, i32
  }
  func.func @transform_6(%arg0: i32) -> (i32, i32) {
    %c0_i32 = arith.constant 0 : i32
    %c0_i32_0 = arith.constant 0 : i32
    %c0_i32_1 = arith.constant 0 : i32
    return %c0_i32, %c0_i32_0 : i32, i32
  }
  func.func @transform_7(%arg0: i32) -> (i32, i32) {
    %c0_i32 = arith.constant 0 : i32
    %c0_i32_0 = arith.constant 0 : i32
    %c0_i32_1 = arith.constant 0 : i32
    return %c0_i32, %c0_i32_0 : i32, i32
  }
  func.func @transform_8(%arg0: i32) -> (i32, i32) {
    %c0_i32 = arith.constant 0 : i32
    %c0_i32_0 = arith.constant 0 : i32
    return %arg0, %c0_i32 : i32, i32
  }
}

</mosaic_0001>

<bundles_post_ra>
// kernel: tpu_custom_call.1
= control target key start
LH: loop header
LB: loop body
LE: loop exit
PB: predicated region body
PF: predicated region fallthrough
CT: control target
= control target key end

     0   :  { %s2373_s29 = smov 0   ;;  %s3454_s0 = inlined_call_operand.vmem [shape: f32[384,36], index: 0, kind: input, shape index: {}]   ;;  %s3455_s1 = inlined_call_operand.vmem [shape: f32[384,1], index: 1, kind: input, shape index: {}]   ;;  %s3456_s2 = inlined_call_operand.vmem [shape: f32[36,32], index: 2, kind: input, shape index: {}]   ;;  %s3457_s3 = inlined_call_operand.vmem [shape: f32[1,32], index: 3, kind: input, shape index: {}]   ;;  %s3458_s4 = inlined_call_operand.vmem [shape: f32[32,32], index: 4, kind: input, shape index: {}]   ;;  %s3459_s5 = inlined_call_operand.vmem [shape: f32[1,32], index: 5, kind: input, shape index: {}]   ;;  %s3460_s6 = inlined_call_operand.vmem [shape: f32[1,32], index: 6, kind: input, shape index: {}]   ;;  %s3461_s7 = inlined_call_operand.<no memory space> [shape: f32[1,1], index: 7, kind: input, shape index: {}]   ;;  %s3462_s8 = inlined_call_operand.vmem [shape: f32[384,64], index: 8, kind: output, shape index: {}]  }
   0x1   :  { %v13_v0 = vstv %s3461_s7 }
   0x2   :  { %14 = vst [vmem:[#allocation2] sm:$0x1] %v13_v0 }
   0x3 LB: > { %s2003_s30 = sadd.s32 4294967295, %s2321_s29   ;;  %p2007_p0 = scmp.ge.s32.totalorder %s2321_s29, 1  ;;  %s2321_s29 = sphi %s2373_s29, %s20_s29  }
   0x4   : > { %p276_p1 = scmp.lt.s32.totalorder %s2321_s29, 4 }
   0x6   : > { %p277_p2 = pnand %p2007_p0, %p276_p1 }
   0x7   : > { %s2008_s12 = sshll.u32 (!%p277_p2), %s2003_s30, 4  ;;  %s2324_s19 = smov (!%p277_p2), 32  }
   0x8   : > { %280 = sbr.rel (%p277_p2) target bundleno = 798 (0x31e), region = 52  ;;  %p316_p3 = scmp.lt.s32.totalorder (!%p277_p2), %s2008_s12, 47 }
   0xd   : > { %v353_v1 = vld [vmem:[%s3456_s2 + $0x20] sm:$0xf]  ;;  %vm407_vm0 = vcmask 1043456   ;;  %v352_v2 = vld [vmem:[%s3456_s2 + $0x18] sm:$0xff]  ;;  %v351_v3 = vld [vmem:[%s3456_s2 + $0x10] sm:$0xff]  ;;  %s3520_s12 = smov (!%p316_p3, %s2008_s12), 47 }
   0xe   : > { %2014 = vmatpush.msk.msra.mxu0 %vm407_vm0, %v353_v1  ;;  %2097 = vmatpush.msk.msra.mxu2 %vm407_vm0, %v353_v1  ;;  %v350_v4 = vld [vmem:[%s3456_s2 + $0x8] sm:$0xff]  ;;  %s2393_s17 = sshll.u32 %s3520_s12, 3  ;;  %v349_v5 = vld [vmem:[%s3456_s2] sm:$0xff]  ;;  %vm358_vm1 = vcmask 293888   ;;  %v799_v23 = vld [vmem:[%s3458_s4 + $0x18] sm:$0xff]  ;;  %vm804_vm6 = vcmask 261120  }
   0xf   : > { %s2402_s22 = scalar_lea.vmem %s3454_s0, %s2393_s17  ;;  %v2439_v22 = vld [vmem:[%s3457_s3] ss:$0 sm:$0xff]  ;;  %865 = vmatpush.msra.mxu1 %v799_v23  ;;  %2102 = vmatpush.msra.mxu3 %v799_v23  ;;  %v798_v24 = vld [vmem:[%s3458_s4 + $0x10] sm:$0xff]  ;;  %v797_v27 = vld [vmem:[%s3458_s4 + $0x8] sm:$0xff]  ;;  %s2662_s13 = scalar_lea.vmem %s3455_s1, %s2393_s17 }
  0x10   : > { %423 = vmatpush.msra.mxu0 %v352_v2  ;;  %2098 = vmatpush.msra.mxu2 %v352_v2  ;;  %v333_v6 = vld [vmem:[%s2402_s22] sm:$0xff]  ;;  %v334_v8 = vld [vmem:[%s2402_s22 + $0x8] sm:$0xff]  ;;  %v335_v10 = vld [vmem:[%s2402_s22 + $0x10] sm:$0xff] }
  0x11   : > { %v341_v7 = vld [vmem:[%s2402_s22 + $0x40] sm:$0xff]  ;;  %v342_v9 = vld [vmem:[%s2402_s22 + $0x48] sm:$0xff]  ;;  %v343_v11 = vld [vmem:[%s2402_s22 + $0x50] sm:$0xff]  ;;  %866 = vmatpush.msra.mxu1 %v798_v24  ;;  %2103 = vmatpush.msra.mxu3 %v798_v24 }
  0x12   : > { %424 = vmatpush.msra.mxu0 %v351_v3  ;;  %2099 = vmatpush.msra.mxu2 %v351_v3  ;;  %v336_v12 = vld [vmem:[%s2402_s22 + $0x18] sm:$0xff]  ;;  %v337_v14 = vld [vmem:[%s2402_s22 + $0x20] sm:$0xff]  ;;  %v338_v16 = vld [vmem:[%s2402_s22 + $0x28] sm:$0xff] }
  0x13   : > { %v344_v13 = vld [vmem:[%s2402_s22 + $0x58] sm:$0xff]  ;;  %v345_v15 = vld [vmem:[%s2402_s22 + $0x60] sm:$0xff]  ;;  %v346_v17 = vld [vmem:[%s2402_s22 + $0x68] sm:$0xff]  ;;  %867 = vmatpush.msra.mxu1 %v797_v27  ;;  %2104 = vmatpush.msra.mxu3 %v797_v27 }
  0x14   : > { %425 = vmatpush.msra.mxu0 %v350_v4  ;;  %2100 = vmatpush.msra.mxu2 %v350_v4  ;;  %v339_v18 = vld [vmem:[%s2402_s22 + $0x30] sm:$0xff]  ;;  %v340_v20 = vld [vmem:[%s2402_s22 + $0x38] sm:$0xff]  ;;  %v796_v29 = vld [vmem:[%s3458_s4] sm:$0xff] }
  0x15   : > { %v347_v19 = vld [vmem:[%s2402_s22 + $0x70] sm:$0xff]  ;;  %v348_v21 = vld [vmem:[%s2402_s22 + $0x78] sm:$0xff]  ;;  %868 = vmatpush.msra.mxu1 %v796_v29  ;;  %2105 = vmatpush.msra.mxu3 %v796_v29  ;;  %s3385_s22 = scalar_lea.vmem %s3462_s8, %s2393_s17 }
  0x16   : > { %426 = vmatpush.msra.mxu0 %v349_v5  ;;  %2101 = vmatpush.msra.mxu2 %v349_v5 }
  0x17   : > { %2015 = vmatmul.msk.f32.vlgmr.msra.gmra.mxu0 %vm358_vm1, %v333_v6  ;;  %2023 = vmatmul.msk.f32.vlgmr.msra.gmra.mxu2 %vm358_vm1, %v341_v7 }
  0x1f   : > { %2016 = vmatmul.msk.f32.gmra.mxu0 %vm358_vm1, %v334_v8  ;;  %2024 = vmatmul.msk.f32.gmra.mxu2 %vm358_vm1, %v342_v9 }
  0x27   : > { %2017 = vmatmul.msk.f32.gmra.mxu0 %vm358_vm1, %v335_v10  ;;  %2025 = vmatmul.msk.f32.gmra.mxu2 %vm358_vm1, %v343_v11 }
  0x2f   : > { %2018 = vmatmul.msk.f32.gmra.mxu0 %vm358_vm1, %v336_v12  ;;  %2026 = vmatmul.msk.f32.gmra.mxu2 %vm358_vm1, %v344_v13 }
  0x37   : > { %2019 = vmatmul.msk.f32.gmra.mxu0 %vm358_vm1, %v337_v14  ;;  %2027 = vmatmul.msk.f32.gmra.mxu2 %vm358_vm1, %v345_v15 }
  0x3f   : > { %2020 = vmatmul.msk.f32.gmra.mxu0 %vm358_vm1, %v338_v16  ;;  %2028 = vmatmul.msk.f32.gmra.mxu2 %vm358_vm1, %v346_v17 }
  0x47   : > { %2021 = vmatmul.msk.f32.gmra.mxu0 %vm358_vm1, %v339_v18  ;;  %2029 = vmatmul.msk.f32.gmra.mxu2 %vm358_vm1, %v347_v19 }
  0x4f   : > { %2022 = vmatmul.msk.f32.gmra.mxu0 %vm358_vm1, %v340_v20  ;;  %2030 = vmatmul.msk.f32.gmra.mxu2 %vm358_vm1, %v348_v21 }
  0x94   : > { %v428_v25 = vpop.f32.mrf.mxu0 }
  0x95   : > { %v429_v26 = vadd.f32 %v2439_v22, %v428_v25 }
  0x97   : > { %v2031_v28 = vmul.f32 -1.442695, %v429_v26 }
  0x99   : > { %2123 = vpow2.f32 %v2031_v28 }
  0x9a   : > { %v452_v30 = vpop.f32.mrf.mxu2 }
  0x9b   : > { %v2455_v31 = vadd.f32 %v2439_v22, %v452_v30 }
  0x9c   : > { %v431_v32 = vpop.f32.mrf.mxu0 }
  0x9d   : > { %v2458_v33 = vadd.f32 %v2439_v22, %v431_v32  ;;  %v2039_v2 = vmul.f32 -1.442695, %v2455_v31 }
  0x9f   : > { %v2124_v34 = vpop.eup %2123  ;;  %v2032_v35 = vmul.f32 -1.442695, %v2458_v33 }
  0xa0   : > { %v524_v36 = vadd.f32 1.0, %v2124_v34 }
  0xa1   : > { %2125 = vpow2.f32 %v2032_v35 }
  0xa2   : > { %2127 = vrcp.f32 %v524_v36  ;;  %v455_v37 = vpop.f32.mrf.mxu2  ;;  %vm545_vm2 = vweird.f32 %v524_v36  ;;  %v551_v47 = vand.u32 2147483648, %v524_v36  ;;  %v549_v50 = vand.u32 2147483647, %v524_v36 }
  0xa3   : > { %v2462_v38 = vadd.f32 %v2439_v22, %v455_v37 }
  0xa4   : > { %v434_v39 = vpop.f32.mrf.mxu0  ;;  %v552_v56 = vor.u32 1.1754944e-38, %v551_v47  ;;  %vm550_vm5 = vcmp.eq.f32.partialorder %v549_v50, 8.507059e+37 }
  0xa5   : > { %v2040_v40 = vmul.f32 -1.442695, %v2462_v38  ;;  %v2466_v41 = vadd.f32 %v2439_v22, %v434_v39 }
  0xa7   : > { %v2126_v42 = vpop.eup %2125  ;;  %2129 = vpow2.f32 %v2040_v40  ;;  %v2033_v43 = vmul.f32 -1.442695, %v2466_v41 }
  0xa8   : > { %v2128_v44 = vpop.eup %2127  ;;  %v525_v46 = vadd.f32 1.0, %v2126_v42 }
  0xa9   : > { %v541_v45 = vmul.f32 %v2128_v44, %v524_v36  ;;  %2131 = vpow2.f32 %v2033_v43  ;;  %vm546_vm3 = vweird.f32 %v2128_v44 }
  0xaa   : > { %v458_v48 = vpop.f32.mrf.mxu2  ;;  %2133 = vrcp.f32 %v525_v46  ;;  %vm547_vm4 = vmor %vm545_vm2, %vm546_vm3  ;;  %v564_v6 = vand.u32 2147483647, %v525_v46  ;;  %v566_v7 = vand.u32 2147483648, %v525_v46  ;;  %vm560_vm7 = vweird.f32 %v525_v46 }
  0xab   : > { %v542_v49 = vsub.f32 1.0, %v541_v45  ;;  %v2470_v51 = vadd.f32 %v2439_v22, %v458_v48 }
  0xac   : > { %v437_v52 = vpop.f32.mrf.mxu0  ;;  %vm2495_vm10 = vcmp.eq.f32.partialorder %v564_v6, 8.507059e+37  ;;  %v567_v17 = vor.u32 1.1754944e-38, %v566_v7 }
  0xad   : > { %v2130_v53 = vpop.eup %2129  ;;  %v543_v54 = vmul.f32 %v2128_v44, %v542_v49  ;;  %v2473_v55 = vadd.f32 %v2439_v22, %v437_v52  ;;  %v2041_v58 = vmul.f32 -1.442695, %v2470_v51 }
  0xae   : > { %v2475_v57 = vadd.f32 1.0, %v2130_v53 }
  0xaf   : > { %v2132_v59 = vpop.eup %2131  ;;  %v544_v60 = vadd.f32 %v2128_v44, %v543_v54  ;;  %v2034_v0 = vmul.f32 -1.442695, %v2473_v55 }
  0xb0   : > { %2135 = vrcp.f32 %v2475_v57  ;;  %v2134_v61 = vpop.eup %2133  ;;  %v2479_v63 = vadd.f32 1.0, %v2132_v59  ;;  %v684_v21 = vand.u32 2147483647, %v2475_v57  ;;  %v686_v23 = vand.u32 2147483648, %v2475_v57 }
  0xb1   : > { %v548_v62 = vsel %vm547_vm4, %v2128_v44, %v544_v60  ;;  %2137 = vpow2.f32 %v2041_v58  ;;  %v556_v3 = vmul.f32 %v2134_v61, %v525_v46  ;;  %vm561_vm8 = vweird.f32 %v2134_v61 }
  0xb2   : > { %v553_v1 = vsel %vm550_vm5, %v552_v56, %v548_v62  ;;  %v461_v4 = vpop.f32.mrf.mxu2  ;;  %2139 = vrcp.f32 %v2479_v63  ;;  %vm2491_vm9 = vmor %vm560_vm7, %vm561_vm8  ;;  %vm575_vm11 = vweird.f32 %v2479_v63  ;;  %v579_v30 = vand.u32 2147483647, %v2479_v63 }
  0xb3   : > { %v780_v5 = vmul.f32 %v553_v1, %v429_v26  ;;  %v557_v8 = vsub.f32 1.0, %v556_v3  ;;  %2141 = vpow2.f32 %v2034_v0  ;;  %v2485_v10 = vadd.f32 %v2439_v22, %v461_v4 }
  0xb4   : > { %v440_v9 = vpop.f32.mrf.mxu0  ;;  %2143 = vpow2.f32 %v2039_v2  ;;  %v581_v37 = vand.u32 2147483648, %v2479_v63  ;;  %vm680_vm14 = vweird.f32 %v2475_v57  ;;  %vm685_vm0 = vcmp.eq.f32.partialorder %v684_v21, 8.507059e+37 }
  0xb5   : > { %v2488_v11 = vadd.f32 %v2439_v22, %v440_v9  ;;  %2047 = vmatmul.msk.f32.vlgmr.msra.gmra.mxu1 %vm804_vm6, %v780_v5  ;;  %v558_v13 = vmul.f32 %v2134_v61, %v557_v8  ;;  %v2042_v19 = vmul.f32 -1.442695, %v2485_v10  ;;  %v687_v47 = vor.u32 1.1754944e-38, %v686_v23 }
  0xb6   : > { %v2136_v12 = vpop.eup %2135  ;;  %vm2531_vm2 = vcmp.eq.f32.partialorder %v579_v30, 8.507059e+37  ;;  %v582_v53 = vor.u32 1.1754944e-38, %v581_v37 }
  0xb7   : > { %v2138_v14 = vpop.eup %2137  ;;  %v676_v18 = vmul.f32 %v2136_v12, %v2475_v57  ;;  %v559_v20 = vadd.f32 %v2134_v61, %v558_v13  ;;  %2145 = vpow2.f32 %v2042_v19  ;;  %v2035_v27 = vmul.f32 -1.442695, %v2488_v11 }
  0xb8   : > { %v2503_v24 = vadd.f32 1.0, %v2138_v14  ;;  %v2140_v25 = vpop.eup %2139  ;;  %vm681_vm12 = vweird.f32 %v2136_v12 }
  0xb9   : > { %v677_v26 = vsub.f32 1.0, %v676_v18  ;;  %v563_v28 = vsel %vm2491_vm9, %v2134_v61, %v559_v20  ;;  %v571_v29 = vmul.f32 %v2140_v25, %v2479_v63  ;;  %v2142_v34 = vpop.eup %2141  ;;  %vm576_vm13 = vweird.f32 %v2140_v25  ;;  %vm682_vm15 = vmor %vm680_vm14, %vm681_vm12 }
  0xba   : > { %2147 = vrcp.f32 %v2503_v24  ;;  %v464_v32 = vpop.f32.mrf.mxu2  ;;  %v568_v35 = vsel %vm2495_vm10, %v567_v17, %v563_v28  ;;  %v2144_v39 = vpop.eup %2143  ;;  %v2516_v43 = vadd.f32 1.0, %v2142_v34  ;;  %vm2527_vm1 = vmor %vm575_vm11, %vm576_vm13  ;;  %v699_v1 = vand.u32 2147483647, %v2503_v24 }
  0xbb   : > { %v678_v36 = vmul.f32 %v2136_v12, %v677_v26  ;;  %v781_v40 = vmul.f32 %v568_v35, %v2458_v33  ;;  %v572_v42 = vsub.f32 1.0, %v571_v29  ;;  %2149 = vpow2.f32 %v2035_v27 }
  0xbc   : > { %v443_v44 = vpop.f32.mrf.mxu0  ;;  %v2520_v46 = vadd.f32 %v2439_v22, %v464_v32  ;;  %2151 = vrcp.f32 %v2516_v43  ;;  %v2541_v61 = vadd.f32 1.0, %v2144_v39  ;;  %v701_v2 = vand.u32 2147483648, %v2503_v24 }
  0xbd   : > { %v679_v45 = vadd.f32 %v2136_v12, %v678_v36  ;;  %v573_v48 = vmul.f32 %v2140_v25, %v572_v42  ;;  %2048 = vmatmul.msk.f32.gmra.mxu1 %vm804_vm6, %v781_v40  ;;  %v2146_v33 = vpop.eup %2145  ;;  %v2539_v60 = vadd.f32 %v2439_v22, %v443_v44  ;;  %v594_v7 = vand.u32 2147483647, %v2516_v43 }
  0xbe   : > { %v2043_v54 = vmul.f32 -1.442695, %v2520_v46  ;;  %v2536_v59 = vadd.f32 1.0, %v2146_v33  ;;  %vm695_vm3 = vweird.f32 %v2503_v24  ;;  %vm2561_vm5 = vcmp.eq.f32.partialorder %v699_v1, 8.507059e+37 }
  0xbf   : > { %v683_v49 = vsel %vm682_vm15, %v2136_v12, %v679_v45  ;;  %v574_v58 = vadd.f32 %v2140_v25, %v573_v48  ;;  %v2036_v13 = vmul.f32 -1.442695, %v2539_v60  ;;  %v702_v18 = vor.u32 1.1754944e-38, %v701_v2 }
  0xc0   : > { %v2148_v56 = vpop.eup %2147  ;;  %v688_v57 = vsel %vm685_vm0, %v687_v47, %v683_v49  ;;  %2153 = vrcp.f32 %v2536_v59  ;;  %vm590_vm7 = vweird.f32 %v2516_v43  ;;  %vm2568_vm10 = vcmp.eq.f32.partialorder %v594_v7, 8.507059e+37 }
  0xc1   : > { %v789_v62 = vmul.f32 %v688_v57, %v2462_v38  ;;  %v691_v63 = vmul.f32 %v2148_v56, %v2503_v24  ;;  %v578_v0 = vsel %vm2527_vm1, %v2140_v25, %v574_v58  ;;  %v2150_v4 = vpop.eup %2149  ;;  %v596_v38 = vand.u32 2147483648, %v2516_v43 }
  0xc2   : > { %v467_v3 = vpop.f32.mrf.mxu2  ;;  %v583_v5 = vsel %vm2531_vm2, %v582_v53, %v578_v0  ;;  %v2152_v8 = vpop.eup %2151  ;;  %v2556_v12 = vadd.f32 1.0, %v2150_v4  ;;  %2155 = vpow2.f32 %v2043_v54  ;;  %vm696_vm4 = vweird.f32 %v2148_v56 }
  0xc3   : > { %v692_v6 = vsub.f32 1.0, %v691_v63  ;;  %2056 = vmatmul.msk.f32.vlgmr.msra.gmra.mxu3 %vm804_vm6, %v789_v62  ;;  %v782_v9 = vmul.f32 %v583_v5, %v2466_v41  ;;  %v586_v16 = vmul.f32 %v2152_v8, %v2516_v43  ;;  %vm591_vm8 = vweird.f32 %v2152_v8  ;;  %vm697_vm9 = vmor %vm695_vm3, %vm696_vm4 }
  0xc4   : > { %v446_v14 = vpop.f32.mrf.mxu0  ;;  %2157 = vrcp.f32 %v2556_v12  ;;  %v597_v23 = vor.u32 1.1754944e-38, %v596_v38  ;;  %v2573_v24 = vadd.f32 %v2439_v22, %v467_v3  ;;  %vm710_vm11 = vweird.f32 %v2536_v59  ;;  %vm2584_vm12 = vmor %vm590_vm7, %vm591_vm8 }
  0xc5   : > { %v693_v15 = vmul.f32 %v2148_v56, %v692_v6  ;;  %2049 = vmatmul.msk.f32.gmra.mxu1 %vm804_vm6, %v782_v9  ;;  %v587_v19 = vsub.f32 1.0, %v586_v16  ;;  %2159 = vpow2.f32 %v2036_v13  ;;  %v2576_v25 = vadd.f32 %v2439_v22, %v446_v14 }
  0xc6   : > { %v2154_v20 = vpop.eup %2153  ;;  %v714_v34 = vand.u32 2147483647, %v2536_v59  ;;  %v716_v35 = vand.u32 2147483648, %v2536_v59  ;;  %v2044_v36 = vmul.f32 -1.442695, %v2573_v24  ;;  %vm605_vm13 = vweird.f32 %v2556_v12 }
  0xc7   : > { %v694_v41 = vadd.f32 %v2148_v56, %v693_v15  ;;  %v588_v27 = vmul.f32 %v2152_v8, %v587_v19  ;;  %v706_v28 = vmul.f32 %v2154_v20, %v2536_v59  ;;  %v2037_v43 = vmul.f32 -1.442695, %v2576_v25 }
  0xc8   : > { %v2156_v29 = vpop.eup %2155  ;;  %2161 = vpow2.f32 %v2044_v36  ;;  %vm711_vm14 = vweird.f32 %v2154_v20  ;;  %v609_v52 = vand.u32 2147483647, %v2556_v12  ;;  %v611_v53 = vand.u32 2147483648, %v2556_v12 }
  0xc9   : > { %v698_v26 = vsel %vm697_vm9, %v2148_v56, %v694_v41  ;;  %v589_v40 = vadd.f32 %v2152_v8, %v588_v27  ;;  %v707_v42 = vsub.f32 1.0, %v706_v28  ;;  %v2592_v44 = vadd.f32 1.0, %v2156_v29  ;;  %vm712_vm0 = vmor %vm710_vm11, %vm711_vm14 }
  0xca   : > { %v703_v30 = vsel %vm2561_vm5, %v702_v18, %v698_v26  ;;  %v470_v37 = vpop.f32.mrf.mxu2  ;;  %v2158_v45 = vpop.eup %2157  ;;  %v717_v62 = vor.u32 1.1754944e-38, %v716_v35  ;;  %vm715_vm1 = vcmp.eq.f32.partialorder %v714_v34, 8.507059e+37  ;;  %v612_v5 = vor.u32 1.1754944e-38, %v611_v53 }
  0xcb   : > { %v790_v39 = vmul.f32 %v703_v30, %v2470_v51  ;;  %v2597_v47 = vadd.f32 %v2439_v22, %v470_v37  ;;  %v2160_v48 = vpop.eup %2159  ;;  %v593_v33 = vsel %vm2584_vm12, %v2152_v8, %v589_v40  ;;  %v708_v49 = vmul.f32 %v2154_v20, %v707_v42 }
  0xcc   : > { %v601_v51 = vmul.f32 %v2158_v45, %v2556_v12  ;;  %v598_v50 = vsel %vm2568_vm10, %v597_v23, %v593_v33  ;;  %2163 = vrcp.f32 %v2592_v44  ;;  %v449_v54 = vpop.f32.mrf.mxu0  ;;  %vm606_vm15 = vweird.f32 %v2158_v45 }
  0xcd   : > { %2057 = vmatmul.msk.f32.gmra.mxu3 %vm804_vm6, %v790_v39  ;;  %v783_v56 = vmul.f32 %v598_v50, %v2473_v55  ;;  %v709_v57 = vadd.f32 %v2154_v20, %v708_v49  ;;  %v2611_v63 = vadd.f32 1.0, %v2160_v48  ;;  %2165 = vpow2.f32 %v2037_v43  ;;  %vm2620_vm2 = vmor %vm605_vm13, %vm606_vm15 }
  0xce   : > { %v602_v58 = vsub.f32 1.0, %v601_v51  ;;  %v2045_v0 = vmul.f32 -1.442695, %v2597_v47  ;;  %v2615_v3 = vadd.f32 %v2439_v22, %v449_v54  ;;  %v2162_v55 = vpop.eup %2161  ;;  %vm610_vm3 = vcmp.eq.f32.partialorder %v609_v52, 8.507059e+37  ;;  %v1728_v52 = vld [vmem:[%s2662_s13 + $0x10] sm:$0xff] }
  0xcf   : > { %v713_v1 = vsel %vm712_vm0, %v2154_v20, %v709_v57  ;;  %2050 = vmatmul.msk.f32.gmra.mxu1 %vm804_vm6, %v783_v56  ;;  %2167 = vrcp.f32 %v2611_v63  ;;  %v2626_v8 = vadd.f32 1.0, %v2162_v55  ;;  %vm725_vm4 = vweird.f32 %v2592_v44  ;;  %v1727_v57 = vld [vmem:[%s2662_s13 + $0x8] sm:$0xff] }
  0xd0   : > { %v603_v2 = vmul.f32 %v2158_v45, %v602_v58  ;;  %v718_v4 = vsel %vm715_vm1, %v717_v62, %v713_v1  ;;  %2169 = vpow2.f32 %v2045_v0  ;;  %v2038_v13 = vmul.f32 -1.442695, %v2615_v3  ;;  %v1726_v1 = vld [vmem:[%s2662_s13] sm:$0xff] }
  0xd1   : > { %v791_v7 = vmul.f32 %v718_v4, %v2485_v10  ;;  %2171 = vrcp.f32 %v2541_v61  ;;  %v729_v19 = vand.u32 2147483647, %v2592_v44  ;;  %v731_v20 = vand.u32 2147483648, %v2592_v44 }
  0xd2   : > { %v473_v6 = vpop.f32.mrf.mxu2  ;;  %v604_v38 = vadd.f32 %v2158_v45, %v603_v2  ;;  %v2164_v9 = vpop.eup %2163  ;;  %2173 = vrcp.f32 %v2626_v8  ;;  %v624_v27 = vand.u32 2147483647, %v2611_v63  ;;  %vm620_vm7 = vweird.f32 %v2611_v63 }
  0xd3   : > { %v2630_v12 = vadd.f32 %v2439_v22, %v473_v6  ;;  %v721_v15 = vmul.f32 %v2164_v9, %v2592_v44  ;;  %v2166_v10 = vpop.eup %2165  ;;  %2175 = vpow2.f32 %v2038_v13  ;;  %vm726_vm5 = vweird.f32 %v2164_v9 }
  0xd4   : > { %v608_v14 = vsel %vm2620_vm2, %v2158_v45, %v604_v38  ;;  %v2640_v22 = vadd.f32 1.0, %v2166_v10  ;;  %v626_v28 = vand.u32 2147483648, %v2611_v63  ;;  %vm727_vm9 = vmor %vm725_vm4, %vm726_vm5  ;;  %vm730_vm10 = vcmp.eq.f32.partialorder %v729_v19, 8.507059e+37  ;;  %v1731_v19 = vld [vmem:[%s2662_s13 + $0x28] sm:$0xff] }
  0xd5   : > { %2058 = vmatmul.msk.f32.gmra.mxu3 %vm804_vm6, %v791_v7  ;;  %v613_v16 = vsel %vm610_vm3, %v612_v5, %v608_v14  ;;  %v722_v18 = vsub.f32 1.0, %v721_v15  ;;  %v2168_v41 = vpop.eup %2167  ;;  %v2046_v21 = vmul.f32 -1.442695, %v2630_v12  ;;  %v732_v36 = vor.u32 1.1754944e-38, %v731_v20 }
  0xd6   : > { %v784_v17 = vmul.f32 %v613_v16, %v2488_v11  ;;  %v616_v26 = vmul.f32 %v2168_v41, %v2611_v63  ;;  %v2170_v11 = vpop.eup %2169  ;;  %vm621_vm8 = vweird.f32 %v2168_v41  ;;  %2177 = vrcp.f32 %v2640_v22 }
  0xd7   : > { %v723_v23 = vmul.f32 %v2164_v9, %v722_v18  ;;  %v2651_v29 = vpop.eup %2171  ;;  %v2653_v34 = vadd.f32 1.0, %v2170_v11  ;;  %2179 = vpow2.f32 %v2046_v21  ;;  %vm2664_vm11 = vcmp.eq.f32.partialorder %v624_v27, 8.507059e+37  ;;  %vm2672_vm12 = vmor %vm620_vm7, %vm621_vm8 }
  0xd8   : > { %2051 = vmatmul.msk.f32.gmra.mxu1 %vm804_vm6, %v784_v17  ;;  %v617_v32 = vsub.f32 1.0, %v616_v26  ;;  %v2174_v35 = vpop.eup %2173  ;;  %v627_v48 = vor.u32 1.1754944e-38, %v626_v28  ;;  %vm740_vm13 = vweird.f32 %v2626_v8  ;;  %v744_v50 = vand.u32 2147483647, %v2626_v8  ;;  %v1730_v26 = vld [vmem:[%s2662_s13 + $0x20] sm:$0xff]  ;;  %v1729_v28 = vld [vmem:[%s2662_s13 + $0x18] sm:$0xff] }
  0xd9   : > { %v724_v30 = vadd.f32 %v2164_v9, %v723_v23  ;;  %v736_v42 = vmul.f32 %v2174_v35, %v2626_v8  ;;  %v2176_v45 = vpop.eup %2175  ;;  %2181 = vrcp.f32 %v2653_v34  ;;  %v746_v54 = vand.u32 2147483648, %v2626_v8 }
  0xda   : > { %v618_v39 = vmul.f32 %v2168_v41, %v617_v32  ;;  %vm635_vm14 = vweird.f32 %v2640_v22  ;;  %v2683_v56 = vadd.f32 1.0, %v2176_v45  ;;  %vm741_vm15 = vweird.f32 %v2174_v35 }
  0xdb   : > { %v728_v37 = vsel %vm727_vm9, %v2164_v9, %v724_v30  ;;  %v737_v51 = vsub.f32 1.0, %v736_v42  ;;  %v2323_v0 = vmov 0   ;;  %v639_v55 = vand.u32 2147483647, %v2640_v22  ;;  %vm742_vm1 = vmor %vm740_vm13, %vm741_vm15 }
  0xdc   : > { %v733_v44 = vsel %vm730_vm10, %v732_v36, %v728_v37  ;;  %v619_v49 = vadd.f32 %v2168_v41, %v618_v39  ;;  %v2178_v53 = vpop.eup %2177  ;;  %2118 = vset.pattern.permute.xlu0 %v2323_v0  ;;  %v641_v4 = vand.u32 2147483648, %v2640_v22  ;;  %2183 = vrcp.f32 %v2683_v56  ;;  %2117 = vset.pattern.permute.xlu1 %v2323_v0 }
  0xdd   : > { %v792_v33 = vmul.f32 %v733_v44, %v2520_v46  ;;  %v2180_v58 = vpop.eup %2179  ;;  %v738_v63 = vmul.f32 %v2174_v35, %v737_v51  ;;  %v631_v46 = vmul.f32 %v2178_v53, %v2640_v22  ;;  %1754 = vperm.xlu0 %2118, %v1728_v52   ;;  %vm636_vm0 = vweird.f32 %v2178_v53  ;;  %1749 = vperm.xlu1 %2117, %v1727_v57   ;;  %v1734_v52 = vld [vmem:[%s2662_s13 + $0x40] sm:$0xff]  ;;  %v1733_v57 = vld [vmem:[%s2662_s13 + $0x38] sm:$0xff] }
  0xde   : > { %v623_v62 = vsel %vm2672_vm12, %v2168_v41, %v619_v49  ;;  %2116 = vset.pattern.permute.xlu2 %v2323_v0  ;;  %v661_v38 = vmul.f32 %v2651_v29, %v2541_v61  ;;  %v747_v9 = vor.u32 1.1754944e-38, %v746_v54  ;;  %v2702_v13 = vadd.f32 1.0, %v2180_v58  ;;  %vm2709_vm3 = vmor %vm635_vm14, %vm636_vm0 }
  0xdf   : > { %2059 = vmatmul.msk.f32.gmra.mxu3 %vm804_vm6, %v792_v33  ;;  %v628_v2 = vsel %vm2664_vm11, %v627_v48, %v623_v62  ;;  %v739_v5 = vadd.f32 %v2174_v35, %v738_v63  ;;  %v632_v6 = vsub.f32 1.0, %v631_v46  ;;  %v2182_v7 = vpop.eup %2181  ;;  %1744 = vperm.xlu2 %2116, %v1726_v1   ;;  %vm745_vm2 = vcmp.eq.f32.partialorder %v744_v50, 8.507059e+37 }
  0xe0   : > { %v785_v59 = vmul.f32 %v628_v2, %v2539_v60  ;;  %v751_v15 = vmul.f32 %v2182_v7, %v2653_v34  ;;  %v642_v16 = vor.u32 1.1754944e-38, %v641_v4  ;;  %2185 = vrcp.f32 %v2702_v13 }
  0xe1   : > { %v743_v14 = vsel %vm742_vm1, %v2174_v35, %v739_v5  ;;  %v633_v60 = vmul.f32 %v2178_v53, %v632_v6  ;;  %vm640_vm4 = vcmp.eq.f32.partialorder %v639_v55, 8.507059e+37  ;;  %v662_v21 = vsub.f32 1.0, %v661_v38 }
  0xe2   : > { %2052 = vmatmul.msk.f32.gmra.mxu1 %vm804_vm6, %v785_v59  ;;  %v748_v10 = vsel %vm745_vm2, %v747_v9, %v743_v14  ;;  %v752_v41 = vsub.f32 1.0, %v751_v15  ;;  %v2184_v20 = vpop.eup %2183  ;;  %vm755_vm5 = vweird.f32 %v2653_v34  ;;  %v759_v22 = vand.u32 2147483647, %v2653_v34  ;;  %v1736_v9 = vld [vmem:[%s2662_s13 + $0x50] sm:$0xff]  ;;  %v1738_v15 = vld [vmem:[%s2662_s13 + $0x60] sm:$0xff] }
  0xe3   : > { %v793_v17 = vmul.f32 %v748_v10, %v2573_v24  ;;  %v634_v18 = vadd.f32 %v2178_v53, %v633_v60  ;;  %v761_v23 = vand.u32 2147483648, %v2653_v34  ;;  %vm756_vm7 = vweird.f32 %v2182_v7  ;;  %v1740_v14 = vld [vmem:[%s2662_s13 + $0x70] sm:$0xff]  ;;  %v1739_v60 = vld [vmem:[%s2662_s13 + $0x68] sm:$0xff] }
  0xe4   : > { %v753_v11 = vmul.f32 %v2182_v7, %v752_v41  ;;  %v646_v24 = vmul.f32 %v2184_v20, %v2683_v56  ;;  %vm650_vm8 = vweird.f32 %v2683_v56  ;;  %v654_v32 = vand.u32 2147483647, %v2683_v56  ;;  %vm757_vm10 = vmor %vm755_vm5, %vm756_vm7 }
  0xe5   : > { %v638_v27 = vsel %vm2709_vm3, %v2178_v53, %v634_v18  ;;  %v656_v35 = vand.u32 2147483648, %v2683_v56  ;;  %1769 = vperm.xlu0 %2118, %v1731_v19   ;;  %vm651_vm9 = vweird.f32 %v2184_v20  ;;  %1764 = vperm.xlu1 %2117, %v1730_v26   ;;  %v663_v42 = vmul.f32 %v2651_v29, %v662_v21 }
  0xe6   : > { %v643_v30 = vsel %vm640_vm4, %v642_v16, %v638_v27  ;;  %v754_v37 = vadd.f32 %v2182_v7, %v753_v11  ;;  %v647_v39 = vsub.f32 1.0, %v646_v24  ;;  %v2186_v40 = vpop.eup %2185  ;;  %v762_v45 = vor.u32 1.1754944e-38, %v761_v23  ;;  %vm2737_vm12 = vmor %vm650_vm8, %vm651_vm9 }
  0xe7   : > { %2060 = vmatmul.msk.f32.gmra.mxu3 %vm804_vm6, %v793_v17  ;;  %v786_v36 = vmul.f32 %v643_v30, %v2576_v25  ;;  %1759 = vperm.xlu2 %2116, %v1729_v28   ;;  %vm760_vm11 = vcmp.eq.f32.partialorder %v759_v22, 8.507059e+37  ;;  %v766_v25 = vmul.f32 %v2186_v40, %v2702_v13  ;;  %v657_v34 = vor.u32 1.1754944e-38, %v656_v35 }
  0xe8   : > { %v758_v44 = vsel %vm757_vm10, %v2182_v7, %v754_v37  ;;  %v648_v43 = vmul.f32 %v2184_v20, %v647_v39  ;;  %vm655_vm13 = vcmp.eq.f32.partialorder %v654_v32, 8.507059e+37  ;;  %v664_v53 = vadd.f32 %v2651_v29, %v663_v42  ;;  %v1737_v7 = vld [vmem:[%s2662_s13 + $0x58] sm:$0xff] }
  0xe9   : > { %v763_v48 = vsel %vm760_vm11, %v762_v45, %v758_v44  ;;  %v767_v50 = vsub.f32 1.0, %v766_v25  ;;  %vm666_vm14 = vweird.f32 %v2651_v29  ;;  %v776_v54 = vand.u32 2147483648, %v2702_v13 }
  0xea   : > { %2053 = vmatmul.msk.f32.gmra.mxu1 %vm804_vm6, %v786_v36  ;;  %v794_v49 = vmul.f32 %v763_v48, %v2597_v47  ;;  %v649_v51 = vadd.f32 %v2184_v20, %v648_v43  ;;  %vm771_vm15 = vweird.f32 %v2186_v40  ;;  %v774_v62 = vand.u32 2147483647, %v2702_v13  ;;  %v1732_v47 = vld [vmem:[%s2662_s13 + $0x30] sm:$0xff]  ;;  %v2801_v48 = vld [vmem:[%s3460_s6] ss:$0 sm:$0xff] }
  0xeb   : > { %v768_v58 = vmul.f32 %v2186_v40, %v767_v50  ;;  %vm665_vm0 = vweird.f32 %v2541_v61  ;;  %v671_v63 = vand.u32 2147483648, %v2541_v61  ;;  %v669_v1 = vand.u32 2147483647, %v2541_v61 }
  0xec   : > { %v653_v56 = vsel %vm2737_vm12, %v2184_v20, %v649_v51  ;;  %vm2754_vm1 = vmor %vm665_vm0, %vm666_vm14  ;;  %vm770_vm2 = vweird.f32 %v2702_v13  ;;  %v777_v4 = vor.u32 1.1754944e-38, %v776_v54  ;;  %vm775_vm4 = vcmp.eq.f32.partialorder %v774_v62, 8.507059e+37  ;;  %v1735_v13 = vld [vmem:[%s2662_s13 + $0x48] sm:$0xff] }
  0xed   : > { %v658_v46 = vsel %vm655_vm13, %v657_v34, %v653_v56  ;;  %1784 = vperm.xlu0 %2118, %v1734_v52   ;;  %v769_v55 = vadd.f32 %v2186_v40, %v768_v58  ;;  %1779 = vperm.xlu1 %2117, %v1733_v57   ;;  %vm772_vm3 = vmor %vm770_vm2, %vm771_vm15  ;;  %v668_v59 = vsel %vm2754_vm1, %v2651_v29, %v664_v53  ;;  %v672_v61 = vor.u32 1.1754944e-38, %v671_v63 }
  0xee   : > { %v787_v2 = vmul.f32 %v658_v46, %v2615_v3  ;;  %vm670_vm5 = vcmp.eq.f32.partialorder %v669_v1, 8.507059e+37 }
  0xef   : > { %2061 = vmatmul.msk.f32.gmra.mxu3 %vm804_vm6, %v794_v49  ;;  %1774 = vperm.xlu2 %2116, %v1732_v47   ;;  %v773_v5 = vsel %vm772_vm3, %v2186_v40, %v769_v55  ;;  %v673_v38 = vsel %vm670_vm5, %v672_v61, %v668_v59 }
  0xf0   : > { %v778_v3 = vsel %vm775_vm4, %v777_v4, %v773_v5  ;;  %v788_v29 = vmul.f32 %v673_v38, %v2455_v31 }
  0xf1   : > { %v795_v6 = vmul.f32 %v778_v3, %v2630_v12  ;;  %v2778_v12 = vld [vmem:[%s3459_s5] ss:$0 sm:$0xff] }
  0xf2   : > { %2054 = vmatmul.msk.f32.gmra.mxu1 %vm804_vm6, %v787_v2 }
  0xf5   : > { %1799 = vperm.xlu0 %2118, %v1737_v7   ;;  %1794 = vperm.xlu1 %2117, %v1736_v9  }
  0xf7   : > { %2062 = vmatmul.msk.f32.gmra.mxu3 %vm804_vm6, %v795_v6  ;;  %1789 = vperm.xlu2 %2116, %v1735_v13  }
  0xfa   : > { %2055 = vmatmul.msk.f32.gmra.mxu1 %vm804_vm6, %v788_v29 }
  0xfd   : > { %1814 = vperm.xlu0 %2118, %v1740_v14   ;;  %1809 = vperm.xlu1 %2117, %v1739_v60  }
  0xff   : > { %1804 = vperm.xlu2 %2116, %v1738_v15  }
 0x132   : > { %v870_v10 = vpop.f32.mrf.mxu1 }
 0x133   : > { %v871_v8 = vadd.f32 %v2778_v12, %v870_v10 }
 0x135   : > { %v2063_v16 = vmul.f32 -1.442695, %v871_v8 }
 0x137   : > { %2187 = vpow2.f32 %v2063_v16 }
 0x13a   : > { %v873_v31 = vpop.f32.mrf.mxu1 }
 0x13b   : > { %v2782_v17 = vadd.f32 %v2778_v12, %v873_v31 }
 0x13d   : > { %v2188_v18 = vpop.eup %2187  ;;  %v2064_v19 = vmul.f32 -1.442695, %v2782_v17 }
 0x13e   : > { %v966_v41 = vadd.f32 1.0, %v2188_v18 }
 0x140   : > { %2189 = vrcp.f32 %v966_v41  ;;  %v993_v35 = vand.u32 2147483648, %v966_v41  ;;  %v991_v37 = vand.u32 2147483647, %v966_v41  ;;  %vm987_vm8 = vweird.f32 %v966_v41 }
 0x141   : > { %2191 = vpow2.f32 %v2064_v19 }
 0x142   : > { %v876_v20 = vpop.f32.mrf.mxu1  ;;  %v994_v42 = vor.u32 1.1754944e-38, %v993_v35  ;;  %vm992_vm10 = vcmp.eq.f32.partialorder %v991_v37, 8.507059e+37 }
 0x143   : > { %v2786_v21 = vadd.f32 %v2778_v12, %v876_v20 }
 0x145   : > { %v2065_v23 = vmul.f32 -1.442695, %v2786_v21 }
 0x146   : > { %v2190_v22 = vpop.eup %2189  ;;  %v897_v26 = vpop.f32.mrf.mxu3 }
 0x147   : > { %v2192_v27 = vpop.eup %2191  ;;  %v983_v11 = vmul.f32 %v2190_v22, %v966_v41  ;;  %v2790_v24 = vadd.f32 %v2778_v12, %v897_v26  ;;  %2193 = vpow2.f32 %v2065_v23  ;;  %vm988_vm7 = vweird.f32 %v2190_v22 }
 0x148   : > { %v967_v28 = vadd.f32 1.0, %v2192_v27  ;;  %vm989_vm9 = vmor %vm987_vm8, %vm988_vm7 }
 0x149   : > { %v984_v30 = vsub.f32 1.0, %v983_v11  ;;  %v2072_v32 = vmul.f32 -1.442695, %v2790_v24 }
 0x14a   : > { %2195 = vrcp.f32 %v967_v28  ;;  %v1006_v62 = vand.u32 2147483647, %v967_v28  ;;  %v1008_v47 = vand.u32 2147483648, %v967_v28  ;;  %vm1002_vm12 = vweird.f32 %v967_v28 }
 0x14b   : > { %v985_v36 = vmul.f32 %v2190_v22, %v984_v30  ;;  %2197 = vpow2.f32 %v2072_v32 }
 0x14c   : > { %v879_v45 = vpop.f32.mrf.mxu1  ;;  %vm1007_vm14 = vcmp.eq.f32.partialorder %v1006_v62, 8.507059e+37  ;;  %v1009_v59 = vor.u32 1.1754944e-38, %v1008_v47 }
 0x14d   : > { %v986_v39 = vadd.f32 %v2190_v22, %v985_v36  ;;  %v2194_v40 = vpop.eup %2193  ;;  %v2796_v25 = vadd.f32 %v2778_v12, %v879_v45 }
 0x14e   : > { %v2793_v43 = vadd.f32 1.0, %v2194_v40 }
 0x14f   : > { %v990_v44 = vsel %vm989_vm9, %v2190_v22, %v986_v39  ;;  %v2066_v57 = vmul.f32 -1.442695, %v2796_v25 }
 0x150   : > { %v2196_v33 = vpop.eup %2195  ;;  %v995_v34 = vsel %vm992_vm10, %v994_v42, %v990_v44  ;;  %v900_v49 = vpop.f32.mrf.mxu3  ;;  %2199 = vrcp.f32 %v2793_v43  ;;  %v1023_v6 = vand.u32 2147483648, %v2793_v43  ;;  %v1021_v15 = vand.u32 2147483647, %v2793_v43 }
 0x151   : > { %v2198_v51 = vpop.eup %2197  ;;  %v2803_v50 = vmul.f32 %v995_v34, %v871_v8  ;;  %v998_v52 = vmul.f32 %v2196_v33, %v967_v28  ;;  %v2810_v56 = vadd.f32 %v2778_v12, %v900_v49  ;;  %vm1003_vm11 = vweird.f32 %v2196_v33 }
 0x152   : > { %v2806_v53 = vadd.f32 1.0, %v2198_v51  ;;  %vm1004_vm13 = vmor %vm1002_vm12, %vm1003_vm11  ;;  %vm1017_vm0 = vweird.f32 %v2793_v43  ;;  %v1024_v18 = vor.u32 1.1754944e-38, %v1023_v6  ;;  %vm1022_vm3 = vcmp.eq.f32.partialorder %v1021_v15, 8.507059e+37 }
 0x153   : > { %v999_v54 = vsub.f32 1.0, %v998_v52  ;;  %v1242_v58 = vmul.f32 %v2801_v48, %v2803_v50  ;;  %v2073_v46 = vmul.f32 -1.442695, %v2810_v56 }
 0x154   : > { %2201 = vrcp.f32 %v2806_v53  ;;  %v1126_v22 = vand.u32 2147483647, %v2806_v53  ;;  %v1128_v23 = vand.u32 2147483648, %v2806_v53  ;;  %vm1122_vm4 = vweird.f32 %v2806_v53 }
 0x155   : > { %v1000_v63 = vmul.f32 %v2196_v33, %v999_v54  ;;  %2203 = vpow2.f32 %v2066_v57  ;;  %v882_v0 = vpop.f32.mrf.mxu1  ;;  %v1258_v1 = vsel %vm804_vm6, %v1242_v58, 0.0 }
 0x156   : > { %v2200_v2 = vpop.eup %2199  ;;  %v2818_v4 = vadd.f32 %v2778_v12, %v882_v0  ;;  %1259 = vadd.xlane.f32.xlu0 %v1258_v1  ;;  %2205 = vpow2.f32 %v2073_v46  ;;  %v1129_v37 = vor.u32 1.1754944e-38, %v1128_v23  ;;  %vm1127_vm7 = vcmp.eq.f32.partialorder %v1126_v22, 8.507059e+37 }
 0x157   : > { %v1001_v55 = vadd.f32 %v2196_v33, %v1000_v63  ;;  %v1013_v5 = vmul.f32 %v2200_v2, %v2793_v43  ;;  %vm1018_vm15 = vweird.f32 %v2200_v2 }
 0x158   : > { %v903_v61 = vpop.f32.mrf.mxu3  ;;  %v2067_v7 = vmul.f32 -1.442695, %v2818_v4  ;;  %vm1019_vm1 = vmor %vm1017_vm0, %vm1018_vm15 }
 0x159   : > { %v1005_v3 = vsel %vm1004_vm13, %v2196_v33, %v1001_v55  ;;  %v2824_v38 = vadd.f32 %v2778_v12, %v903_v61  ;;  %v1014_v29 = vsub.f32 1.0, %v1013_v5 }
 0x15a   : > { %v2202_v9 = vpop.eup %2201  ;;  %v1010_v13 = vsel %vm1007_vm14, %v1009_v59, %v1005_v3  ;;  %2207 = vpow2.f32 %v2067_v7 }
 0x15b   : > { %v2204_v14 = vpop.eup %2203  ;;  %v2827_v60 = vmul.f32 %v1010_v13, %v2782_v17  ;;  %v1118_v10 = vmul.f32 %v2202_v9, %v2806_v53  ;;  %v1015_v8 = vmul.f32 %v2200_v2, %v1014_v29  ;;  %v2074_v31 = vmul.f32 -1.442695, %v2824_v38 }
 0x15c   : > { %v2831_v16 = vadd.f32 1.0, %v2204_v14  ;;  %v2206_v17 = vpop.eup %2205  ;;  %vm1123_vm2 = vweird.f32 %v2202_v9 }
 0x15d   : > { %v1119_v41 = vsub.f32 1.0, %v1118_v10  ;;  %v1243_v19 = vmul.f32 %v2801_v48, %v2827_v60  ;;  %v1016_v20 = vadd.f32 %v2200_v2, %v1015_v8  ;;  %v2840_v27 = vadd.f32 1.0, %v2206_v17  ;;  %vm1124_vm5 = vmor %vm1122_vm4, %vm1123_vm2 }
 0x15e   : > { %2209 = vrcp.f32 %v2831_v16  ;;  %v1036_v52 = vand.u32 2147483647, %v2831_v16  ;;  %v1038_v63 = vand.u32 2147483648, %v2831_v16  ;;  %vm1032_vm9 = vweird.f32 %v2831_v16 }
 0x15f   : > { %v1120_v26 = vmul.f32 %v2202_v9, %v1119_v41  ;;  %2211 = vpow2.f32 %v2074_v31  ;;  %v1020_v11 = vsel %vm1019_vm1, %v2200_v2, %v1016_v20  ;;  %v1261_v28 = vsel %vm804_vm6, %v1243_v19, 0.0  ;;  %v885_v39 = vpop.f32.mrf.mxu1 }
 0x160   : > { %v2208_v30 = vpop.eup %2207  ;;  %v1025_v32 = vsel %vm1022_vm3, %v1024_v18, %v1020_v11  ;;  %2213 = vrcp.f32 %v2840_v27  ;;  %1262 = vadd.xlane.f32.xlu0 %v1261_v28  ;;  %v2851_v45 = vadd.f32 %v2778_v12, %v885_v39  ;;  %vm1037_vm10 = vcmp.eq.f32.partialorder %v1036_v52, 8.507059e+37 }
 0x161   : > { %v1121_v35 = vadd.f32 %v2202_v9, %v1120_v26  ;;  %v2846_v36 = vmul.f32 %v1025_v32, %v2786_v21  ;;  %v2848_v42 = vadd.f32 1.0, %v2208_v30  ;;  %v1039_v3 = vor.u32 1.1754944e-38, %v1038_v63 }
 0x162   : > { %v906_v33 = vpop.f32.mrf.mxu3  ;;  %v2068_v58 = vmul.f32 -1.442695, %v2851_v45  ;;  %v1141_v7 = vand.u32 2147483647, %v2840_v27  ;;  %v1143_v8 = vand.u32 2147483648, %v2840_v27  ;;  %vm1137_vm14 = vweird.f32 %v2840_v27 }
 0x163   : > { %v1125_v40 = vsel %vm1124_vm5, %v2202_v9, %v1121_v35  ;;  %v1244_v34 = vmul.f32 %v2801_v48, %v2846_v36  ;;  %2215 = vrcp.f32 %v2848_v42  ;;  %v2867_v62 = vadd.f32 %v2778_v12, %v906_v33 }
 0x164   : > { %v2210_v44 = vpop.eup %2209  ;;  %v1130_v43 = vsel %vm1127_vm7, %v1129_v37, %v1125_v40  ;;  %v1051_v41 = vand.u32 2147483647, %v2848_v42  ;;  %v1053_v19 = vand.u32 2147483648, %v2848_v42  ;;  %vm2915_vm0 = vcmp.eq.f32.partialorder %v1141_v7, 8.507059e+37 }
 0x165   : > { %v2212_v49 = vpop.eup %2211  ;;  %v1028_v21 = vmul.f32 %v2210_v44, %v2831_v16  ;;  %v2858_v51 = vmul.f32 %v1130_v43, %v2790_v24  ;;  %v1264_v47 = vsel %vm804_vm6, %v1244_v34, 0.0  ;;  %vm1033_vm8 = vweird.f32 %v2210_v44 }
 0x166   : > { %v2861_v53 = vadd.f32 1.0, %v2212_v49  ;;  %v2863_v54 = vpop.eup %2213  ;;  %1265 = vadd.xlane.f32.xlu1 %v1264_v47  ;;  %v2075_v1 = vmul.f32 -1.442695, %v2867_v62  ;;  %vm1034_vm11 = vmor %vm1032_vm9, %vm1033_vm8  ;;  %v1144_v40 = vor.u32 1.1754944e-38, %v1143_v8  ;;  %vm1047_vm1 = vweird.f32 %v2848_v42 }
 0x167   : > { %v1029_v57 = vsub.f32 1.0, %v1028_v21  ;;  %v1133_v24 = vmul.f32 %v2863_v54, %v2840_v27  ;;  %v888_v2 = vpop.f32.mrf.mxu1  ;;  %v1251_v61 = vmul.f32 %v2801_v48, %v2858_v51  ;;  %vm1138_vm12 = vweird.f32 %v2863_v54 }
 0x168   : > { %2217 = vrcp.f32 %v2861_v53  ;;  %v2879_v5 = vadd.f32 %v2778_v12, %v888_v2  ;;  %vm2911_vm15 = vmor %vm1137_vm14, %vm1138_vm12  ;;  %vm1052_vm3 = vcmp.eq.f32.partialorder %v1051_v41, 8.507059e+37  ;;  %vm1152_vm5 = vweird.f32 %v2861_v53 }
 0x169   : > { %v1030_v46 = vmul.f32 %v2210_v44, %v1029_v57  ;;  %v1134_v0 = vsub.f32 1.0, %v1133_v24  ;;  %2219 = vpow2.f32 %v2068_v58  ;;  %v2876_v55 = vpop.eup %2215  ;;  %v1285_v31 = vsel %vm804_vm6, %v1251_v61, 0.0 }
 0x16a   : > { %v1043_v9 = vmul.f32 %v2876_v55, %v2848_v42  ;;  %v909_v13 = vpop.f32.mrf.mxu3  ;;  %2221 = vpow2.f32 %v2075_v1  ;;  %v2069_v14 = vmul.f32 -1.442695, %v2879_v5  ;;  %1286 = vadd.xlane.f32.xlu0 %v1285_v31  ;;  %vm1048_vm13 = vweird.f32 %v2876_v55 }
 0x16b   : > { %v1031_v59 = vadd.f32 %v2210_v44, %v1030_v46  ;;  %v1135_v6 = vmul.f32 %v2863_v54, %v1134_v0  ;;  %v2889_v15 = vadd.f32 %v2778_v12, %v909_v13  ;;  %vm2921_vm2 = vmor %vm1047_vm1, %vm1048_vm13  ;;  %v1054_v57 = vor.u32 1.1754944e-38, %v1053_v19 }
 0x16c   : > { %v1044_v16 = vsub.f32 1.0, %v1043_v9  ;;  %2223 = vpow2.f32 %v2069_v14  ;;  %v1158_v24 = vand.u32 2147483648, %v2861_v53 }
 0x16d   : > { %v1035_v29 = vsel %vm1034_vm11, %v2210_v44, %v1031_v59  ;;  %v2076_v17 = vmul.f32 -1.442695, %v2889_v15  ;;  %v1136_v11 = vadd.f32 %v2863_v54, %v1135_v6 }
 0x16e   : > { %v1040_v10 = vsel %vm1037_vm10, %v1039_v3, %v1035_v29  ;;  %v2893_v18 = vpop.eup %2217  ;;  %v1045_v23 = vmul.f32 %v2876_v55, %v1044_v16  ;;  %v1159_v14 = vor.u32 1.1754944e-38, %v1158_v24 }
 0x16f   : > { %v2220_v20 = vpop.eup %2219  ;;  %v2899_v22 = vmul.f32 %v1040_v10, %v2796_v25  ;;  %v1148_v26 = vmul.f32 %v2893_v18, %v2861_v53  ;;  %2225 = vpow2.f32 %v2076_v17  ;;  %v891_v32 = vpop.f32.mrf.mxu1  ;;  %v1140_v42 = vsel %vm2911_vm15, %v2863_v54, %v1136_v11 }
 0x170   : > { %v2907_v28 = vadd.f32 1.0, %v2220_v20  ;;  %v1046_v30 = vadd.f32 %v2876_v55, %v1045_v23  ;;  %v2222_v35 = vpop.eup %2221  ;;  %v2929_v33 = vadd.f32 %v2778_v12, %v891_v32  ;;  %vm1153_vm4 = vweird.f32 %v2893_v18 }
 0x171   : > { %v1149_v25 = vsub.f32 1.0, %v1148_v26  ;;  %v2926_v43 = vadd.f32 1.0, %v2222_v35  ;;  %v1245_v49 = vmul.f32 %v2801_v48, %v2899_v22  ;;  %v1156_v54 = vand.u32 2147483647, %v2861_v53  ;;  %vm2958_vm7 = vmor %vm1152_vm5, %vm1153_vm4 }
 0x172   : > { %2227 = vrcp.f32 %v2907_v28  ;;  %v912_v34 = vpop.f32.mrf.mxu3  ;;  %v2224_v21 = vpop.eup %2223  ;;  %v1050_v52 = vsel %vm2921_vm2, %v2876_v55, %v1046_v30  ;;  %v2070_v2 = vmul.f32 -1.442695, %v2929_v33  ;;  %v1145_v61 = vsel %vm2915_vm0, %v1144_v40, %v1140_v42 }
 0x173   : > { %v1150_v44 = vmul.f32 %v2893_v18, %v1149_v25  ;;  %2229 = vrcp.f32 %v2926_v43  ;;  %v2943_v47 = vadd.f32 %v2778_v12, %v912_v34  ;;  %v2948_v46 = vadd.f32 1.0, %v2224_v21 }
 0x174   : > { %v1055_v0 = vsel %vm1052_vm3, %v1054_v57, %v1050_v52  ;;  %v1267_v55 = vsel %vm804_vm6, %v1245_v49, 0.0  ;;  %v1068_v53 = vand.u32 2147483648, %v2907_v28  ;;  %v1173_v9 = vand.u32 2147483648, %v2926_v43 }
 0x175   : > { %v1151_v58 = vadd.f32 %v2893_v18, %v1150_v44  ;;  %v2226_v63 = vpop.eup %2225  ;;  %2231 = vrcp.f32 %v2948_v46  ;;  %1268 = vadd.xlane.f32.xlu1 %v1267_v55  ;;  %v2077_v13 = vmul.f32 -1.442695, %v2943_v47  ;;  %v2972_v29 = vmul.f32 %v1055_v0, %v2818_v4 }
 0x176   : > { %v2950_v1 = vadd.f32 1.0, %v2226_v63  ;;  %v1171_v10 = vand.u32 2147483647, %v2926_v43  ;;  %v2979_v16 = vmul.f32 %v1145_v61, %v2810_v56  ;;  %vm1157_vm8 = vcmp.eq.f32.partialorder %v1156_v54, 8.507059e+37 }
 0x177   : > { %v1155_v6 = vsel %vm2958_vm7, %v2893_v18, %v1151_v58  ;;  %v894_v18 = vpop.f32.mrf.mxu1  ;;  %vm1062_vm9 = vweird.f32 %v2907_v28  ;;  %v1066_v4 = vand.u32 2147483647, %v2907_v28  ;;  %v2983_v17 = vor.u32 1.1754944e-38, %v1068_v53 }
 0x178   : > { %v2954_v59 = vpop.eup %2227  ;;  %2233 = vrcp.f32 %v2950_v1  ;;  %v1160_v19 = vsel %vm1157_vm8, %v1159_v14, %v1155_v6  ;;  %vm1167_vm10 = vweird.f32 %v2926_v43  ;;  %v1174_v56 = vor.u32 1.1754944e-38, %v1173_v9 }
 0x179   : > { %v1058_v7 = vmul.f32 %v2954_v59, %v2907_v28  ;;  %v2976_v8 = vpop.eup %2229  ;;  %2235 = vpow2.f32 %v2070_v2  ;;  %vm2991_vm11 = vcmp.eq.f32.partialorder %v1171_v10, 8.507059e+37  ;;  %v2996_v25 = vadd.f32 %v2778_v12, %v894_v18 }
 0x17a   : > { %v915_v41 = vpop.f32.mrf.mxu3  ;;  %v1163_v20 = vmul.f32 %v2976_v8, %v2926_v43  ;;  %2237 = vpow2.f32 %v2077_v13  ;;  %v1246_v35 = vmul.f32 %v2801_v48, %v2972_v29  ;;  %v3004_v37 = vmul.f32 %v1160_v19, %v2824_v38 }
 0x17b   : > { %v1059_v31 = vsub.f32 1.0, %v1058_v7  ;;  %v2989_v26 = vpop.eup %2231  ;;  %v2999_v32 = vadd.f32 %v2778_v12, %v915_v41  ;;  %vm1063_vm12 = vweird.f32 %v2954_v59  ;;  %vm1168_vm13 = vweird.f32 %v2976_v8 }
 0x17c   : > { %v1164_v11 = vsub.f32 1.0, %v1163_v20  ;;  %v1073_v39 = vmul.f32 %v2989_v26, %v2948_v46  ;;  %vm3010_vm14 = vcmp.eq.f32.partialorder %v1066_v4, 8.507059e+37  ;;  %v2071_v44 = vmul.f32 -1.442695, %v2996_v25  ;;  %vm3030_vm15 = vmor %vm1167_vm10, %vm1168_vm13 }
 0x17d   : > { %v1060_v23 = vmul.f32 %v2954_v59, %v1059_v31  ;;  %v2078_v34 = vmul.f32 -1.442695, %v2999_v32  ;;  %v1270_v38 = vsel %vm804_vm6, %v1246_v35, 0.0  ;;  %v1083_v52 = vand.u32 2147483648, %v2948_v46  ;;  %vm3046_vm1 = vmor %vm1062_vm9, %vm1063_vm12 }
 0x17e   : > { %v2234_v40 = vpop.eup %2233  ;;  %v1165_v12 = vmul.f32 %v2976_v8, %v1164_v11  ;;  %v1074_v42 = vsub.f32 1.0, %v1073_v39  ;;  %1271 = vadd.xlane.f32.xlu2 %v1270_v38  ;;  %2239 = vpow2.f32 %v2071_v44  ;;  %v1252_v54 = vmul.f32 %v2801_v48, %v2979_v16 }
 0x17f   : > { %v2236_v49 = vpop.eup %2235  ;;  %v1061_v21 = vadd.f32 %v2954_v59, %v1060_v23  ;;  %v1178_v57 = vmul.f32 %v2234_v40, %v2950_v1  ;;  %v1186_v61 = vand.u32 2147483647, %v2950_v1  ;;  %2241 = vpow2.f32 %v2078_v34 }
 0x180   : > { %v1166_v58 = vadd.f32 %v2976_v8, %v1165_v12  ;;  %v3022_v63 = vadd.f32 1.0, %v2236_v49  ;;  %v2238_v24 = vpop.eup %2237  ;;  %v1075_v2 = vmul.f32 %v2989_v26, %v1074_v42  ;;  %vm1078_vm0 = vweird.f32 %v2989_v26 }
 0x181   : > { %v1179_v55 = vsub.f32 1.0, %v1178_v57  ;;  %v1188_v53 = vand.u32 2147483648, %v2950_v1  ;;  %vm1077_vm2 = vweird.f32 %v2948_v46  ;;  %vm1183_vm3 = vweird.f32 %v2234_v40 }
 0x182   : > { %v1170_v3 = vsel %vm3030_vm15, %v2976_v8, %v1166_v58  ;;  %2243 = vrcp.f32 %v3022_v63  ;;  %v1076_v6 = vadd.f32 %v2989_v26, %v1075_v2  ;;  %v1065_v9 = vsel %vm3046_vm1, %v2954_v59, %v1061_v21  ;;  %vm3061_vm4 = vmor %vm1077_vm2, %vm1078_vm0 }
 0x183   : > { %v1180_v7 = vmul.f32 %v2234_v40, %v1179_v55  ;;  %v1081_v13 = vand.u32 2147483647, %v2948_v46  ;;  %v3056_v14 = vadd.f32 1.0, %v2238_v24  ;;  %v1288_v28 = vsel %vm804_vm6, %v1252_v54, 0.0  ;;  %v3180_v55 = vld [vmem:[#allocation2] ss:$0 sm:$0xff] }
 0x184   : > { %v1175_v10 = vsel %vm2991_vm11, %v1174_v56, %v1170_v3  ;;  %vm1182_vm5 = vweird.f32 %v2950_v1  ;;  %1289 = vadd.xlane.f32.xlu1 %v1288_v28  ;;  %v1253_v59 = vmul.f32 %v2801_v48, %v3004_v37  ;;  %v2240_v18 = vpop.eup %2239  ;;  %v1084_v46 = vor.u32 1.1754944e-38, %v1083_v52 }
 0x185   : > { %v1181_v31 = vadd.f32 %v2234_v40, %v1180_v7  ;;  %vm1184_vm7 = vmor %vm1182_vm5, %vm1183_vm3  ;;  %vm1187_vm8 = vcmp.eq.f32.partialorder %v1186_v61, 8.507059e+37  ;;  %v1189_v41 = vor.u32 1.1754944e-38, %v1188_v53  ;;  %2245 = vrcp.f32 %v3056_v14  ;;  %v2242_v19 = vpop.eup %2241 }
 0x186   : > { %v1070_v4 = vsel %vm3010_vm14, %v2983_v17, %v1065_v9  ;;  %v1080_v1 = vsel %vm3061_vm4, %v2989_v26, %v1076_v6  ;;  %v3075_v23 = vadd.f32 1.0, %v2240_v18  ;;  %v3078_v11 = vmul.f32 %v1175_v10, %v2867_v62 }
 0x187   : > { %v1185_v20 = vsel %vm1184_vm7, %v2234_v40, %v1181_v31  ;;  %v3080_v35 = vadd.f32 1.0, %v2242_v19  ;;  %v1291_v39 = vsel %vm804_vm6, %v1253_v59, 0.0  ;;  %vm1082_vm9 = vcmp.eq.f32.partialorder %v1081_v13, 8.507059e+37 }
 0x188   : > { %v2244_v56 = vpop.eup %2243  ;;  %v1190_v30 = vsel %vm1187_vm8, %v1189_v41, %v1185_v20  ;;  %1292 = vadd.xlane.f32.xlu2 %v1291_v39  ;;  %v3085_v17 = vmul.f32 %v1070_v4, %v2851_v45  ;;  %v1085_v26 = vsel %vm1082_vm9, %v1084_v46, %v1080_v1  ;;  %2247 = vrcp.f32 %v3075_v23  ;;  %v3144_v39 = vpop.permute.xlu0 %1754 }
 0x189   : > { %v1088_v27 = vmul.f32 %v2244_v56, %v3022_v63  ;;  %v3088_v40 = vmul.f32 %v1190_v30, %v2889_v15  ;;  %v1096_v12 = vand.u32 2147483647, %v3022_v63  ;;  %v1098_v44 = vand.u32 2147483648, %v3022_v63 }
 0x18a   : > { %2249 = vrcp.f32 %v3080_v35  ;;  %vm1092_vm10 = vweird.f32 %v3022_v63  ;;  %v1201_v38 = vand.u32 2147483647, %v3056_v14  ;;  %v1254_v45 = vmul.f32 %v2801_v48, %v3078_v11 }
 0x18b   : > { %v1089_v62 = vsub.f32 1.0, %v1088_v27  ;;  %v2246_v34 = vpop.eup %2245  ;;  %v3099_v15 = vmul.f32 %v1085_v26, %v2879_v5  ;;  %vm1093_vm11 = vweird.f32 %v2244_v56  ;;  %v1203_v42 = vand.u32 2147483648, %v3056_v14 }
 0x18c   : > { %v1193_v21 = vmul.f32 %v2246_v34, %v3056_v14  ;;  %v1294_v52 = vsel %vm804_vm6, %v1254_v45, 0.0  ;;  %v1247_v57 = vmul.f32 %v2801_v48, %v3085_v17  ;;  %v1255_v58 = vmul.f32 %v2801_v48, %v3088_v40  ;;  %vm1094_vm13 = vmor %vm1092_vm10, %vm1093_vm11 }
 0x18d   : > { %v1090_v49 = vmul.f32 %v2244_v56, %v1089_v62  ;;  %vm3108_vm12 = vcmp.eq.f32.partialorder %v1096_v12, 8.507059e+37  ;;  %v1099_v5 = vor.u32 1.1754944e-38, %v1098_v44  ;;  %1295 = vadd.xlane.f32.xlu0 %v1294_v52  ;;  %vm1197_vm14 = vweird.f32 %v3056_v14 }
 0x18e   : > { %v1194_v0 = vsub.f32 1.0, %v1193_v21  ;;  %v2248_v2 = vpop.eup %2247  ;;  %vm3115_vm15 = vcmp.eq.f32.partialorder %v1201_v38, 8.507059e+37  ;;  %v1273_v61 = vsel %vm804_vm6, %v1247_v57, 0.0  ;;  %v1297_v3 = vsel %vm804_vm6, %v1255_v58, 0.0 }
 0x18f   : > { %v1091_v54 = vadd.f32 %v2244_v56, %v1090_v49  ;;  %vm1198_vm0 = vweird.f32 %v2246_v34  ;;  %v1103_v7 = vmul.f32 %v2248_v2, %v3075_v23  ;;  %1298 = vadd.xlane.f32.xlu1 %v1297_v3  ;;  %v1204_v9 = vor.u32 1.1754944e-38, %v1203_v42 }
 0x190   : > { %v2250_v53 = vpop.eup %2249  ;;  %v1195_v6 = vmul.f32 %v2246_v34, %v1194_v0  ;;  %1274 = vadd.xlane.f32.xlu2 %v1273_v61  ;;  %v1248_v28 = vmul.f32 %v2801_v48, %v3099_v15  ;;  %v1111_v59 = vand.u32 2147483647, %v3075_v23  ;;  %vm1199_vm1 = vmor %vm1197_vm14, %vm1198_vm0  ;;  %v1113_v18 = vand.u32 2147483648, %v3075_v23  ;;  %v3163_v58 = vpop.permute.xlu0 %1769 }
 0x191   : > { %v1095_v43 = vsel %vm1094_vm13, %v2244_v56, %v1091_v54  ;;  %v1208_v13 = vmul.f32 %v2250_v53, %v3080_v35  ;;  %v1104_v31 = vsub.f32 1.0, %v1103_v7  ;;  %v1216_v41 = vand.u32 2147483647, %v3080_v35  ;;  %v3166_v54 = vpop.permute.xlu1 %1749 }
 0x192   : > { %v1100_v63 = vsel %vm3108_vm12, %v1099_v5, %v1095_v43  ;;  %v1196_v8 = vadd.f32 %v2246_v34, %v1195_v6  ;;  %v1218_v19 = vand.u32 2147483648, %v3080_v35  ;;  %vm1108_vm2 = vweird.f32 %v2248_v2 }
 0x193   : > { %v3128_v10 = vmul.f32 %v1100_v63, %v2929_v33  ;;  %v1209_v46 = vsub.f32 1.0, %v1208_v13  ;;  %v1105_v1 = vmul.f32 %v2248_v2, %v1104_v31  ;;  %vm1213_vm3 = vweird.f32 %v2250_v53 }
 0x194   : > { %v1200_v4 = vsel %vm1199_vm1, %v2246_v34, %v1196_v8  ;;  %v1276_v14 = vsel %vm804_vm6, %v1248_v28, 0.0  ;;  %vm1107_vm4 = vweird.f32 %v3075_v23  ;;  %v1114_v26 = vor.u32 1.1754944e-38, %v1113_v18 }
 0x195   : > { %v1249_v33 = vmul.f32 %v2801_v48, %v3128_v10  ;;  %v1205_v20 = vsel %vm3115_vm15, %v1204_v9, %v1200_v4  ;;  %v1210_v56 = vmul.f32 %v2250_v53, %v1209_v46  ;;  %v1106_v27 = vadd.f32 %v2248_v2, %v1105_v1  ;;  %1277 = vadd.xlane.f32.xlu0 %v1276_v14  ;;  %vm1109_vm5 = vmor %vm1107_vm4, %vm1108_vm2 }
 0x196   : > { %v3142_v30 = vmul.f32 %v1205_v20, %v2943_v47  ;;  %vm1212_vm7 = vweird.f32 %v3080_v35  ;;  %vm1112_vm8 = vcmp.eq.f32.partialorder %v1111_v59, 8.507059e+37  ;;  %v1219_v34 = vor.u32 1.1754944e-38, %v1218_v19 }
 0x197   : > { %v1211_v62 = vadd.f32 %v2250_v53, %v1210_v56  ;;  %v1279_v12 = vsel %vm804_vm6, %v1249_v33, 0.0  ;;  %v1110_v44 = vsel %vm1109_vm5, %v2248_v2, %v1106_v27  ;;  %vm1214_vm9 = vmor %vm1212_vm7, %vm1213_vm3  ;;  %vm1217_vm10 = vcmp.eq.f32.partialorder %v1216_v41, 8.507059e+37 }
 0x198   : > { %v1256_v47 = vmul.f32 %v2801_v48, %v3142_v30  ;;  %1280 = vadd.xlane.f32.xlu1 %v1279_v12  ;;  %v1115_v38 = vsel %vm1112_vm8, %v1114_v26, %v1110_v44  ;;  %v3168_v24 = vpop.permute.xlu0 %1784 }
 0x199   : > { %v1215_v45 = vsel %vm1214_vm9, %v2250_v53, %v1211_v62  ;;  %v3152_v23 = vmul.f32 %v1115_v38, %v2996_v25 }
 0x19a   : > { %v1220_v49 = vsel %vm1217_vm10, %v1219_v34, %v1215_v45  ;;  %v1300_v21 = vsel %vm804_vm6, %v1256_v47, 0.0 }
 0x19b   : > { %v3156_v35 = vmul.f32 %v1220_v49, %v2999_v32  ;;  %1301 = vadd.xlane.f32.xlu2 %v1300_v21  ;;  %v1250_v52 = vmul.f32 %v2801_v48, %v3152_v23  ;;  %v3170_v32 = vpop.permute.xlu1 %1764 }
 0x19d   : > { %v1257_v42 = vmul.f32 %v2801_v48, %v3156_v35  ;;  %v1282_v25 = vsel %vm804_vm6, %v1250_v52, 0.0  ;;  %v3178_v48 = vpop.permute.xlu2 %1744 }
 0x19f   : > { %v1303_v57 = vsel %vm804_vm6, %v1257_v42, 0.0 }
 0x1a0   : > { %1304 = vadd.xlane.f32.xlu0 %v1303_v57  ;;  %v3172_v5 = vpop.permute.xlu0 %1799 }
 0x1a3   : > { %1283 = vadd.xlane.f32.xlu2 %v1282_v25  ;;  %v3174_v0 = vpop.permute.xlu1 %1779 }
 0x1a5   : > { %v3185_v6 = vpop.permute.xlu2 %1759 }
 0x1a8   : > { %v3176_v2 = vpop.permute.xlu0 %1814 }
 0x1ab   : > { %v3182_v61 = vpop.permute.xlu1 %1794 }
 0x1ad   : > { %v3190_v31 = vpop.permute.xlu2 %1774 }
 0x1b3   : > { %v3187_v7 = vpop.permute.xlu1 %1809 }
 0x1b5   : > { %v3193_v14 = vpop.permute.xlu2 %1789 }
 0x1c9   : > { %v1260_v3 = vpop.xlane.xlu0 %1259 }
 0x1ca   : > { %v1310_v53 = vadd.f32 %v3180_v55, %v1260_v3 }
 0x1cc   : > { %v2079_v43 = vmul.f32 -1.442695, %v1310_v53  ;;  %v3196_v53 = vpop.permute.xlu2 %1804 }
 0x1ce   : > { %2251 = vpow2.f32 %v2079_v43 }
 0x1d3   : > { %v1263_v63 = vpop.xlane.xlu0 %1262 }
 0x1d4   : > { %v2252_v9 = vpop.eup %2251  ;;  %v1311_v13 = vadd.f32 %v3180_v55, %v1263_v63 }
 0x1d5   : > { %v1374_v28 = vadd.f32 1.0, %v2252_v9 }
 0x1d6   : > { %v2080_v8 = vmul.f32 -1.442695, %v1311_v13 }
 0x1d7   : > { %2253 = vrcp.f32 %v1374_v28  ;;  %v1401_v56 = vand.u32 2147483648, %v1374_v28  ;;  %v1399_v62 = vand.u32 2147483647, %v1374_v28  ;;  %vm1395_vm12 = vweird.f32 %v1374_v28 }
 0x1d8   : > { %2255 = vpow2.f32 %v2080_v8 }
 0x1d9   : > { %v1266_v59 = vpop.xlane.xlu1 %1265  ;;  %v1402_v47 = vor.u32 1.1754944e-38, %v1401_v56  ;;  %vm1400_vm14 = vcmp.eq.f32.partialorder %v1399_v62, 8.507059e+37 }
 0x1da   : > { %v1312_v18 = vadd.f32 %v3180_v55, %v1266_v59 }
 0x1dc   : > { %v2081_v41 = vmul.f32 -1.442695, %v1312_v18 }
 0x1dd   : > { %v2254_v46 = vpop.eup %2253  ;;  %v1287_v20 = vpop.xlane.xlu0 %1286 }
 0x1de   : > { %v2256_v19 = vpop.eup %2255  ;;  %v1391_v4 = vmul.f32 %v2254_v46, %v1374_v28  ;;  %2257 = vpow2.f32 %v2081_v41  ;;  %v1319_v27 = vadd.f32 %v3180_v55, %v1287_v20  ;;  %vm1396_vm11 = vweird.f32 %v2254_v46 }
 0x1df   : > { %v1375_v1 = vadd.f32 1.0, %v2256_v19  ;;  %vm1397_vm13 = vmor %vm1395_vm12, %vm1396_vm11 }
 0x1e0   : > { %v1392_v33 = vsub.f32 1.0, %v1391_v4  ;;  %v2088_v12 = vmul.f32 -1.442695, %v1319_v27 }
 0x1e1   : > { %2259 = vrcp.f32 %v1375_v1  ;;  %v1416_v25 = vand.u32 2147483648, %v1375_v1  ;;  %v1414_v9 = vand.u32 2147483647, %v1375_v1  ;;  %vm1410_vm0 = vweird.f32 %v1375_v1 }
 0x1e2   : > { %v1393_v26 = vmul.f32 %v2254_v46, %v1392_v33  ;;  %2261 = vpow2.f32 %v2088_v12 }
 0x1e3   : > { %v1417_v18 = vor.u32 1.1754944e-38, %v1416_v25  ;;  %vm1415_vm2 = vcmp.eq.f32.partialorder %v1414_v9, 8.507059e+37 }
 0x1e4   : > { %v1394_v44 = vadd.f32 %v2254_v46, %v1393_v26  ;;  %v2258_v34 = vpop.eup %2257 }
 0x1e5   : > { %v1376_v38 = vadd.f32 1.0, %v2258_v34 }
 0x1e6   : > { %v1398_v45 = vsel %vm1397_vm13, %v2254_v46, %v1394_v44 }
 0x1e7   : > { %v2260_v49 = vpop.eup %2259  ;;  %v1403_v21 = vsel %vm1400_vm14, %v1402_v47, %v1398_v45  ;;  %2263 = vrcp.f32 %v1376_v38  ;;  %v1431_v33 = vand.u32 2147483648, %v1376_v38  ;;  %v1429_v56 = vand.u32 2147483647, %v1376_v38 }
 0x1e8   : > { %1632 = vperm.xlu1 %2117, %v1403_v21   ;;  %v1406_v42 = vmul.f32 %v2260_v49, %v1375_v1  ;;  %v1269_v57 = vpop.xlane.xlu1 %1268  ;;  %v2262_v3 = vpop.eup %2261  ;;  %vm1411_vm15 = vweird.f32 %v2260_v49  ;;  %vm1425_vm4 = vweird.f32 %v1376_v38 }
 0x1e9   : > { %v1313_v43 = vadd.f32 %v3180_v55, %v1269_v57  ;;  %v1383_v13 = vadd.f32 1.0, %v2262_v3  ;;  %vm1412_vm1 = vmor %vm1410_vm0, %vm1411_vm15  ;;  %v1432_v44 = vor.u32 1.1754944e-38, %v1431_v33  ;;  %vm1430_vm7 = vcmp.eq.f32.partialorder %v1429_v56, 8.507059e+37 }
 0x1ea   : > { %v1407_v52 = vsub.f32 1.0, %v1406_v42 }
 0x1eb   : > { %v2082_v8 = vmul.f32 -1.442695, %v1313_v43  ;;  %2265 = vrcp.f32 %v1383_v13  ;;  %v1536_v25 = vand.u32 2147483648, %v1383_v13  ;;  %vm1530_vm9 = vweird.f32 %v1383_v13 }
 0x1ec   : > { %v1408_v63 = vmul.f32 %v2260_v49, %v1407_v52 }
 0x1ed   : > { %v2264_v28 = vpop.eup %2263  ;;  %2267 = vpow2.f32 %v2082_v8 }
 0x1ee   : > { %v1409_v59 = vadd.f32 %v2260_v49, %v1408_v63  ;;  %v1421_v46 = vmul.f32 %v2264_v28, %v1376_v38  ;;  %vm1426_vm3 = vweird.f32 %v2264_v28  ;;  %v1534_v38 = vand.u32 2147483647, %v1383_v13 }
 0x1ef   : > { %vm1427_vm5 = vmor %vm1425_vm4, %vm1426_vm3 }
 0x1f0   : > { %v1413_v41 = vsel %vm1412_vm1, %v2260_v49, %v1409_v59  ;;  %v1422_v4 = vsub.f32 1.0, %v1421_v46  ;;  %vm1535_vm11 = vcmp.eq.f32.partialorder %v1534_v38, 8.507059e+37 }
 0x1f1   : > { %v1418_v19 = vsel %vm1415_vm2, %v1417_v18, %v1413_v41  ;;  %v1272_v27 = vpop.xlane.xlu2 %1271  ;;  %v2266_v26 = vpop.eup %2265 }
 0x1f2   : > { %1637 = vperm.xlu2 %2116, %v1418_v19   ;;  %v1423_v20 = vmul.f32 %v2264_v28, %v1422_v4  ;;  %v1314_v62 = vadd.f32 %v3180_v55, %v1272_v27  ;;  %v1526_v34 = vmul.f32 %v2266_v26, %v1383_v13  ;;  %vm1531_vm8 = vweird.f32 %v2266_v26 }
 0x1f3   : > { %v2268_v1 = vpop.eup %2267  ;;  %vm1532_vm10 = vmor %vm1530_vm9, %vm1531_vm8 }
 0x1f4   : > { %v1424_v12 = vadd.f32 %v2264_v28, %v1423_v20  ;;  %v1377_v47 = vadd.f32 1.0, %v2268_v1  ;;  %v2083_v45 = vmul.f32 -1.442695, %v1314_v62  ;;  %v1527_v42 = vsub.f32 1.0, %v1526_v34 }
 0x1f6   : > { %v1428_v49 = vsel %vm1427_vm5, %v2264_v28, %v1424_v12  ;;  %2269 = vrcp.f32 %v1377_v47  ;;  %v1528_v57 = vmul.f32 %v2266_v26, %v1527_v42  ;;  %v1537_v28 = vor.u32 1.1754944e-38, %v1536_v25 }
 0x1f7   : > { %v1433_v21 = vsel %vm1430_vm7, %v1432_v44, %v1428_v49  ;;  %2271 = vpow2.f32 %v2083_v45  ;;  %v1290_v52 = vpop.xlane.xlu1 %1289  ;;  %v1446_v13 = vand.u32 2147483648, %v1377_v47  ;;  %vm1440_vm13 = vweird.f32 %v1377_v47 }
 0x1f8   : > { %1642 = vperm.xlu0 %2118, %v1433_v21   ;;  %v1320_v3 = vadd.f32 %v3180_v55, %v1290_v52  ;;  %v1529_v43 = vadd.f32 %v2266_v26, %v1528_v57 }
 0x1f9   : > { %v1447_v52 = vor.u32 1.1754944e-38, %v1446_v13 }
 0x1fa   : > { %v2089_v63 = vmul.f32 -1.442695, %v1320_v3  ;;  %v1533_v8 = vsel %vm1532_vm10, %v2266_v26, %v1529_v43  ;;  %v1444_v26 = vand.u32 2147483647, %v1377_v47 }
 0x1fb   : > { %v1293_v9 = vpop.xlane.xlu2 %1292  ;;  %v1538_v19 = vsel %vm1535_vm11, %v1537_v28, %v1533_v8 }
 0x1fc   : > { %v2270_v59 = vpop.eup %2269  ;;  %2273 = vpow2.f32 %v2089_v63  ;;  %v1321_v18 = vadd.f32 %v3180_v55, %v1293_v9  ;;  %vm1445_vm15 = vcmp.eq.f32.partialorder %v1444_v26, 8.507059e+37 }
 0x1fd   : > { %v2272_v46 = vpop.eup %2271  ;;  %v1436_v41 = vmul.f32 %v2270_v59, %v1377_v47  ;;  %vm1441_vm12 = vweird.f32 %v2270_v59 }
 0x1fe   : > { %v3202_v4 = vadd.f32 1.0, %v2272_v46  ;;  %v2090_v33 = vmul.f32 -1.442695, %v1321_v18  ;;  %vm1442_vm14 = vmor %vm1440_vm13, %vm1441_vm12 }
 0x1ff   : > { %v1437_v20 = vsub.f32 1.0, %v1436_v41 }
 0x200   : > { %1677 = vperm.xlu0 %2118, %v1538_v19   ;;  %2275 = vrcp.f32 %v3202_v4  ;;  %v1296_v56 = vpop.xlane.xlu0 %1295  ;;  %v1459_v25 = vand.u32 2147483647, %v3202_v4  ;;  %v1461_v8 = vand.u32 2147483648, %v3202_v4  ;;  %vm1455_vm0 = vweird.f32 %v3202_v4 }
 0x201   : > { %2277 = vpow2.f32 %v2090_v33  ;;  %v1438_v27 = vmul.f32 %v2270_v59, %v1437_v20  ;;  %v1322_v12 = vadd.f32 %v3180_v55, %v1296_v56 }
 0x202   : > { %v2274_v62 = vpop.eup %2273  ;;  %v1299_v34 = vpop.xlane.xlu1 %1298  ;;  %vm3219_vm1 = vcmp.eq.f32.partialorder %v1459_v25, 8.507059e+37  ;;  %v1462_v13 = vor.u32 1.1754944e-38, %v1461_v8 }
 0x203   : > { %v3206_v1 = vadd.f32 1.0, %v2274_v62  ;;  %v1275_v44 = vpop.xlane.xlu2 %1274  ;;  %v1439_v45 = vadd.f32 %v2270_v59, %v1438_v27  ;;  %v2091_v49 = vmul.f32 -1.442695, %v1322_v12  ;;  %v1323_v42 = vadd.f32 %v3180_v55, %v1299_v34 }
 0x204   : > { %v1315_v21 = vadd.f32 %v3180_v55, %v1275_v44 }
 0x205   : > { %2279 = vrcp.f32 %v3206_v1  ;;  %v1443_v57 = vsel %vm1442_vm14, %v2270_v59, %v1439_v45  ;;  %v2092_v43 = vmul.f32 -1.442695, %v1323_v42  ;;  %v1549_v56 = vand.u32 2147483647, %v3206_v1 }
 0x206   : > { %v2276_v3 = vpop.eup %2275  ;;  %2281 = vpow2.f32 %v2091_v49  ;;  %v2084_v38 = vmul.f32 -1.442695, %v1315_v21  ;;  %v1448_v63 = vsel %vm1445_vm15, %v1447_v52, %v1443_v57  ;;  %v1551_v44 = vand.u32 2147483648, %v3206_v1 }
 0x207   : > { %v2278_v9 = vpop.eup %2277  ;;  %1647 = vperm.xlu2 %2116, %v1448_v63   ;;  %v1451_v47 = vmul.f32 %v2276_v3, %v3202_v4  ;;  %vm1456_vm2 = vweird.f32 %v2276_v3  ;;  %vm1545_vm5 = vweird.f32 %v3206_v1  ;;  %vm1550_vm7 = vcmp.eq.f32.partialorder %v1549_v56, 8.507059e+37 }
 0x208   : > { %v3214_v28 = vadd.f32 1.0, %v2278_v9  ;;  %2283 = vpow2.f32 %v2084_v38  ;;  %v1278_v18 = vpop.xlane.xlu0 %1277  ;;  %vm1457_vm3 = vmor %vm1455_vm0, %vm1456_vm2 }
 0x209   : > { %2285 = vpow2.f32 %v2092_v43  ;;  %v1452_v59 = vsub.f32 1.0, %v1451_v47  ;;  %v1316_v46 = vadd.f32 %v3180_v55, %v1278_v18 }
 0x20a   : > { %2287 = vrcp.f32 %v3214_v28  ;;  %v1564_v49 = vand.u32 2147483647, %v3214_v28  ;;  %v1566_v21 = vand.u32 2147483648, %v3214_v28  ;;  %vm1560_vm9 = vweird.f32 %v3214_v28 }
 0x20b   : > { %v2280_v19 = vpop.eup %2279  ;;  %v1281_v33 = vpop.xlane.xlu1 %1280  ;;  %v1453_v20 = vmul.f32 %v2276_v3, %v1452_v59  ;;  %v2085_v26 = vmul.f32 -1.442695, %v1316_v46 }
 0x20c   : > { %v2282_v27 = vpop.eup %2281  ;;  %v1317_v62 = vadd.f32 %v3180_v55, %v1281_v33  ;;  %v1541_v12 = vmul.f32 %v2280_v19, %v3206_v1  ;;  %vm1546_vm4 = vweird.f32 %v2280_v19  ;;  %vm3247_vm10 = vcmp.eq.f32.partialorder %v1564_v49, 8.507059e+37 }
 0x20d   : > { %v3227_v34 = vadd.f32 1.0, %v2282_v27  ;;  %v1454_v45 = vadd.f32 %v2276_v3, %v1453_v20  ;;  %2289 = vpow2.f32 %v2085_v26  ;;  %v1552_v20 = vor.u32 1.1754944e-38, %v1551_v44  ;;  %vm1547_vm8 = vmor %vm1545_vm5, %vm1546_vm4 }
 0x20e   : > { %v2284_v42 = vpop.eup %2283  ;;  %v1302_v52 = vpop.xlane.xlu2 %1301  ;;  %v2086_v57 = vmul.f32 -1.442695, %v1317_v62  ;;  %v1542_v25 = vsub.f32 1.0, %v1541_v12  ;;  %v1567_v1 = vor.u32 1.1754944e-38, %v1566_v21 }
 0x20f   : > { %v2286_v38 = vpop.eup %2285  ;;  %2291 = vrcp.f32 %v3227_v34  ;;  %v3235_v43 = vadd.f32 1.0, %v2284_v42  ;;  %v1324_v63 = vadd.f32 %v3180_v55, %v1302_v52  ;;  %v1458_v9 = vsel %vm1457_vm3, %v2276_v3, %v1454_v45 }
 0x210   : > { %v2288_v47 = vpop.eup %2287  ;;  %v3238_v8 = vadd.f32 1.0, %v2286_v38  ;;  %2293 = vpow2.f32 %v2086_v57  ;;  %v1463_v18 = vsel %vm3219_vm1, %v1462_v13, %v1458_v9  ;;  %v1543_v59 = vmul.f32 %v2280_v19, %v1542_v25 }
 0x211   : > { %2295 = vrcp.f32 %v3235_v43  ;;  %v2093_v4 = vmul.f32 -1.442695, %v1324_v63  ;;  %1652 = vperm.xlu1 %2117, %v1463_v18   ;;  %v1556_v46 = vmul.f32 %v2288_v47, %v3214_v28  ;;  %vm1561_vm11 = vweird.f32 %v2288_v47 }
 0x212   : > { %v1544_v33 = vadd.f32 %v2280_v19, %v1543_v59  ;;  %v1579_v25 = vand.u32 2147483647, %v3227_v34  ;;  %v1581_v38 = vand.u32 2147483648, %v3227_v34  ;;  %vm1562_vm12 = vmor %vm1560_vm9, %vm1561_vm11  ;;  %vm1575_vm14 = vweird.f32 %v3227_v34 }
 0x213   : > { %2297 = vpow2.f32 %v2093_v4  ;;  %v1305_v3 = vpop.xlane.xlu0 %1304  ;;  %v1557_v27 = vsub.f32 1.0, %v1556_v46  ;;  %v2290_v13 = vpop.eup %2289  ;;  %v1474_v4 = vand.u32 2147483647, %v3235_v43  ;;  %vm1470_vm2 = vweird.f32 %v3235_v43 }
 0x214   : > { %2299 = vrcp.f32 %v3238_v8  ;;  %v1548_v26 = vsel %vm1547_vm8, %v2280_v19, %v1544_v33  ;;  %v1325_v62 = vadd.f32 %v3180_v55, %v1305_v3  ;;  %v3253_v12 = vadd.f32 1.0, %v2290_v13 }
 0x215   : > { %v2292_v56 = vpop.eup %2291  ;;  %v1553_v44 = vsel %vm1550_vm7, %v1552_v20, %v1548_v26  ;;  %v1558_v45 = vmul.f32 %v2288_v47, %v1557_v27  ;;  %v1476_v26 = vand.u32 2147483648, %v3235_v43  ;;  %vm1580_vm1 = vcmp.eq.f32.partialorder %v1579_v25, 8.507059e+37 }
 0x216   : > { %v2294_v42 = vpop.eup %2293  ;;  %1682 = vperm.xlu2 %2116, %v1553_v44   ;;  %v1284_v52 = vpop.xlane.xlu2 %1283  ;;  %v2094_v49 = vmul.f32 -1.442695, %v1325_v62  ;;  %v1571_v57 = vmul.f32 %v2292_v56, %v3227_v34  ;;  %2301 = vrcp.f32 %v3253_v12  ;;  %vm1576_vm13 = vweird.f32 %v2292_v56 }
 0x217   : > { %v2296_v19 = vpop.eup %2295  ;;  %v3259_v21 = vadd.f32 1.0, %v2294_v42  ;;  %v1318_v63 = vadd.f32 %v3180_v55, %v1284_v52  ;;  %v1559_v9 = vadd.f32 %v2288_v47, %v1558_v45  ;;  %vm1577_vm0 = vmor %vm1575_vm14, %vm1576_vm13  ;;  %v1582_v45 = vor.u32 1.1754944e-38, %v1581_v38 }
 0x218   : > { %2303 = vpow2.f32 %v2094_v49  ;;  %v1572_v18 = vsub.f32 1.0, %v1571_v57  ;;  %v1466_v59 = vmul.f32 %v2296_v19, %v3235_v43  ;;  %vm1471_vm15 = vweird.f32 %v2296_v19 }
 0x219   : > { %v2298_v46 = vpop.eup %2297  ;;  %2305 = vrcp.f32 %v3259_v21  ;;  %v2087_v33 = vmul.f32 -1.442695, %v1318_v63  ;;  %v1563_v20 = vsel %vm1562_vm12, %v2288_v47, %v1559_v9  ;;  %vm1475_vm3 = vcmp.eq.f32.partialorder %v1474_v4, 8.507059e+37  ;;  %vm1472_vm4 = vmor %vm1470_vm2, %vm1471_vm15 }
 0x21a   : > { %v3267_v3 = vpop.eup %2299  ;;  %v3269_v27 = vadd.f32 1.0, %v2298_v46  ;;  %v1568_v55 = vsel %vm3247_vm10, %v1567_v1, %v1563_v20  ;;  %v1573_v28 = vmul.f32 %v2292_v56, %v1572_v18  ;;  %v1467_v13 = vsub.f32 1.0, %v1466_v59 }
 0x21b   : > { %2307 = vpow2.f32 %v2087_v33  ;;  %1687 = vperm.xlu1 %2117, %v1568_v55   ;;  %v1586_v41 = vmul.f32 %v3267_v3, %v3238_v8  ;;  %v1477_v25 = vor.u32 1.1754944e-38, %v1476_v26  ;;  %v1489_v18 = vand.u32 2147483647, %v3253_v12 }
 0x21c   : > { %2309 = vrcp.f32 %v3269_v27  ;;  %v1574_v62 = vadd.f32 %v2292_v56, %v1573_v28  ;;  %v1468_v47 = vmul.f32 %v2296_v19, %v1467_v13  ;;  %v2302_v44 = vpop.eup %2301  ;;  %vm1591_vm5 = vweird.f32 %v3267_v3 }
 0x21d   : > { %v1481_v52 = vmul.f32 %v2302_v44, %v3253_v12  ;;  %v1587_v38 = vsub.f32 1.0, %v1586_v41  ;;  %vm1486_vm7 = vweird.f32 %v2302_v44  ;;  %vm1485_vm8 = vweird.f32 %v3253_v12 }
 0x21e   : > { %v2304_v1 = vpop.eup %2303  ;;  %v1578_v42 = vsel %vm1577_vm0, %v2292_v56, %v1574_v62  ;;  %v1469_v34 = vadd.f32 %v2296_v19, %v1468_v47  ;;  %v1491_v56 = vand.u32 2147483648, %v3253_v12  ;;  %vm1590_vm9 = vweird.f32 %v3238_v8  ;;  %vm1487_vm11 = vmor %vm1485_vm8, %vm1486_vm7 }
 0x21f   : > { %v3281_v49 = vpop.eup %2305  ;;  %v3283_v57 = vadd.f32 1.0, %v2304_v1  ;;  %v1583_v63 = vsel %vm1580_vm1, %v1582_v45, %v1578_v42  ;;  %v1482_v9 = vsub.f32 1.0, %v1481_v52  ;;  %v1588_v46 = vmul.f32 %v3267_v3, %v1587_v38  ;;  %vm3299_vm10 = vmor %vm1590_vm9, %vm1591_vm5 }
 0x220   : > { %1692 = vperm.xlu0 %2118, %v1583_v63   ;;  %v1473_v43 = vsel %vm1472_vm4, %v2296_v19, %v1469_v34  ;;  %v1596_v19 = vand.u32 2147483648, %v3238_v8  ;;  %v1594_v47 = vand.u32 2147483647, %v3238_v8  ;;  %v1496_v45 = vmul.f32 %v3281_v49, %v3259_v21 }
 0x221   : > { %v2308_v59 = vpop.eup %2307  ;;  %2311 = vrcp.f32 %v3283_v57  ;;  %v1478_v4 = vsel %vm1475_vm3, %v1477_v25, %v1473_v43  ;;  %v1483_v55 = vmul.f32 %v2302_v44, %v1482_v9  ;;  %v1589_v28 = vadd.f32 %v3267_v3, %v1588_v46 }
 0x222   : > { %v2310_v33 = vpop.eup %2309  ;;  %v3291_v20 = vadd.f32 1.0, %v2308_v59  ;;  %1657 = vperm.xlu2 %2116, %v1478_v4   ;;  %vm1490_vm12 = vcmp.eq.f32.partialorder %v1489_v18, 8.507059e+37  ;;  %v1492_v12 = vor.u32 1.1754944e-38, %v1491_v56  ;;  %v1597_v34 = vor.u32 1.1754944e-38, %v1596_v19 }
 0x223   : > { %v1601_v13 = vmul.f32 %v2310_v33, %v3269_v27  ;;  %v1484_v26 = vadd.f32 %v2302_v44, %v1483_v55  ;;  %v1593_v42 = vsel %vm3299_vm10, %v3267_v3, %v1589_v28  ;;  %v1497_v52 = vsub.f32 1.0, %v1496_v45 }
 0x224   : > { %2313 = vrcp.f32 %v3291_v20  ;;  %vm1606_vm13 = vweird.f32 %v2310_v33  ;;  %v1611_v8 = vand.u32 2147483648, %v3269_v27  ;;  %vm1595_vm14 = vcmp.eq.f32.partialorder %v1594_v47, 8.507059e+37 }
 0x225   : > { %v1602_v41 = vsub.f32 1.0, %v1601_v13  ;;  %v1488_v1 = vsel %vm1487_vm11, %v2302_v44, %v1484_v26  ;;  %v1609_v43 = vand.u32 2147483647, %v3269_v27  ;;  %v1498_v9 = vmul.f32 %v3281_v49, %v1497_v52 }
 0x226   : > { %v1493_v25 = vsel %vm1490_vm12, %v1492_v12, %v1488_v1  ;;  %v1598_v18 = vsel %vm1595_vm14, %v1597_v34, %v1593_v42  ;;  %vm1605_vm15 = vweird.f32 %v3269_v27  ;;  %vm1501_vm1 = vweird.f32 %v3281_v49 }
 0x227   : > { %v2312_v63 = vpop.eup %2311  ;;  %v1603_v38 = vmul.f32 %v2310_v33, %v1602_v41  ;;  %1662 = vperm.xlu1 %2117, %v1493_v25   ;;  %vm1607_vm0 = vmor %vm1605_vm15, %vm1606_vm13  ;;  %v1499_v59 = vadd.f32 %v3281_v49, %v1498_v9  ;;  %v1612_v46 = vor.u32 1.1754944e-38, %v1611_v8  ;;  %v1506_v55 = vand.u32 2147483648, %v3259_v21 }
 0x228   : > { %v1616_v3 = vmul.f32 %v2312_v63, %v3283_v57  ;;  %vm1610_vm2 = vcmp.eq.f32.partialorder %v1609_v43, 8.507059e+37  ;;  %vm1500_vm3 = vweird.f32 %v3259_v21  ;;  %v1504_v27 = vand.u32 2147483647, %v3259_v21 }
 0x229   : > { %v1604_v44 = vadd.f32 %v2310_v33, %v1603_v38  ;;  %vm3320_vm4 = vmor %vm1500_vm3, %vm1501_vm1  ;;  %v1626_v47 = vand.u32 2147483648, %v3283_v57  ;;  %vm1621_vm5 = vweird.f32 %v2312_v63  ;;  %v1624_v12 = vand.u32 2147483647, %v3283_v57 }
 0x22a   : > { %v2314_v56 = vpop.eup %2313  ;;  %1697 = vperm.xlu2 %2116, %v1598_v18   ;;  %v1617_v28 = vsub.f32 1.0, %v1616_v3  ;;  %v1507_v41 = vor.u32 1.1754944e-38, %v1506_v55  ;;  %v1521_v21 = vand.u32 2147483648, %v3291_v20  ;;  %vm1505_vm8 = vcmp.eq.f32.partialorder %v1504_v27, 8.507059e+37 }
 0x22b   : > { %v1608_v4 = vsel %vm1607_vm0, %v2310_v33, %v1604_v44  ;;  %v1511_v19 = vmul.f32 %v2314_v56, %v3291_v20  ;;  %v1503_v33 = vsel %vm3320_vm4, %v3281_v49, %v1499_v59  ;;  %vm1516_vm7 = vweird.f32 %v2314_v56  ;;  %v1741_v44 = vld [vmem:[%s2662_s13 + $0x78] sm:$0xff] }
 0x22c   : > { %v1613_v13 = vsel %vm1610_vm2, %v1612_v46, %v1608_v4  ;;  %v1618_v45 = vmul.f32 %v2312_v63, %v1617_v28  ;;  %v1519_v42 = vand.u32 2147483647, %v3291_v20  ;;  %vm1620_vm9 = vweird.f32 %v3283_v57 }
 0x22d   : > { %v1512_v62 = vsub.f32 1.0, %v1511_v19  ;;  %v1508_v52 = vsel %vm1505_vm8, %v1507_v41, %v1503_v33  ;;  %vm1515_vm10 = vweird.f32 %v3291_v20  ;;  %vm1622_vm11 = vmor %vm1620_vm9, %vm1621_vm5  ;;  %v1627_v49 = vor.u32 1.1754944e-38, %v1626_v47 }
 0x22e   : > { %v1619_v34 = vadd.f32 %v2312_v63, %v1618_v45  ;;  %vm1517_vm12 = vmor %vm1515_vm10, %vm1516_vm7  ;;  %vm1625_vm13 = vcmp.eq.f32.partialorder %v1624_v12, 8.507059e+37  ;;  %v1522_v43 = vor.u32 1.1754944e-38, %v1521_v21  ;;  %vm1520_vm14 = vcmp.eq.f32.partialorder %v1519_v42, 8.507059e+37 }
 0x22f   : > { %v1513_v1 = vmul.f32 %v2314_v56, %v1512_v62  ;;  %1702 = vperm.xlu1 %2117, %v1613_v13   ;;  %vm1918_vm15 = vcmask 523264  }
 0x230   : > { %v1623_v38 = vsel %vm1622_vm11, %v2312_v63, %v1619_v34 }
 0x231   : > { %v1514_v25 = vadd.f32 %v2314_v56, %v1513_v1  ;;  %v1628_v9 = vsel %vm1625_vm13, %v1627_v49, %v1623_v38 }
 0x232   : > { %1667 = vperm.xlu2 %2116, %v1508_v52   ;;  %1707 = vperm.xlu0 %2118, %v1628_v9  }
 0x233   : > { %v1518_v8 = vsel %vm1517_vm12, %v2314_v56, %v1514_v25 }
 0x234   : > { %v1523_v18 = vsel %vm1520_vm14, %v1522_v43, %v1518_v8 }
 0x237   : > { %1672 = vperm.xlu1 %2117, %v1523_v18  }
 0x23a   : > { %1819 = vperm.xlu2 %2116, %v1741_v44  }
 0x24c   : > { %v1638_v57 = vpop.permute.xlu2 %1637 }
 0x24d   : > { %v1711_v3 = vmul.f32 %v1638_v57, %v2827_v60 }
 0x24f   : > { %v1823_v20 = vmul.f32 %v3166_v54, %v1711_v3 }
 0x251   : > { %1856 = vrot.lane.b32.xlu0 %v1823_v20, %s2324_s19 }
 0x25a   : > { %v1633_v59 = vpop.permute.xlu1 %1632 }
 0x25b   : > { %v1710_v63 = vmul.f32 %v1633_v59, %v2803_v50 }
 0x25d   : > { %v1822_v56 = vmul.f32 %v3178_v48, %v1710_v63 }
 0x25f   : > { %1854 = vrot.lane.b32.xlu1 %v1822_v56, %s2324_s19 }
 0x261   : > { %v1648_v4 = vpop.permute.xlu2 %1647 }
 0x262   : > { %v1713_v62 = vmul.f32 %v1648_v4, %v2899_v22 }
 0x26a   : > { %v1643_v46 = vpop.permute.xlu0 %1642 }
 0x26b   : > { %v1712_v55 = vmul.f32 %v1643_v46, %v2846_v36 }
 0x26d   : > { %v1824_v19 = vmul.f32 %v3144_v39, %v1712_v55  ;;  %v1825_v39 = vmul.f32 %v3185_v6, %v1713_v62 }
 0x26f   : > { %1858 = vrot.lane.b32.xlu2 %v1824_v19, %s2324_s19 }
 0x270   : > { %v1683_v27 = vpop.permute.xlu2 %1682 }
 0x271   : > { %v1720_v28 = vmul.f32 %v1683_v27, %v2979_v16 }
 0x272   : > { %v1678_v54 = vpop.permute.xlu0 %1677 }
 0x273   : > { %v1719_v13 = vmul.f32 %v1678_v54, %v2858_v51  ;;  %v1832_v26 = vmul.f32 %v3182_v61, %v1720_v28 }
 0x275   : > { %v1831_v48 = vmul.f32 %v3193_v14, %v1719_v13  ;;  %1874 = vrot.lane.b32.xlu0 %v1832_v26, %s2324_s19 }
 0x277   : > { %1872 = vrot.lane.b32.xlu1 %v1831_v48, %s2324_s19 }
 0x27c   : > { %v1658_v47 = vpop.permute.xlu2 %1657 }
 0x27d   : > { %v1715_v25 = vmul.f32 %v1658_v47, %v3085_v17 }
 0x27f   : > { %1860 = vrot.lane.b32.xlu1 %v1825_v39, %s2324_s19 }
 0x283   : > { %v1653_v33 = vpop.permute.xlu1 %1652 }
 0x284   : > { %v1714_v45 = vmul.f32 %v1653_v33, %v2972_v29  ;;  %v1698_v12 = vpop.permute.xlu2 %1697 }
 0x285   : > { %v1723_v52 = vmul.f32 %v1698_v12, %v3088_v40 }
 0x286   : > { %v1826_v41 = vmul.f32 %v3170_v32, %v1714_v45 }
 0x287   : > { %v1835_v38 = vmul.f32 %v3187_v7, %v1723_v52 }
 0x288   : > { %1862 = vrot.lane.b32.xlu0 %v1826_v41, %s2324_s19 }
 0x28c   : > { %v1668_v61 = vpop.permute.xlu2 %1667 }
 0x28d   : > { %v1688_v14 = vpop.permute.xlu1 %1687  ;;  %v1717_v1 = vmul.f32 %v1668_v61, %v3128_v10 }
 0x28e   : > { %v1721_v21 = vmul.f32 %v1688_v14, %v3004_v37 }
 0x28f   : > { %v1829_v42 = vmul.f32 %v3174_v0, %v1717_v1  ;;  %v1827_v0 = vmul.f32 %v3163_v58, %v1715_v25 }
 0x290   : > { %v1833_v6 = vmul.f32 %v3172_v5, %v1721_v21 }
 0x291   : > { %1868 = vrot.lane.b32.xlu0 %v1829_v42, %s2324_s19 }
 0x292   : > { %v1693_v34 = vpop.permute.xlu0 %1692  ;;  %1876 = vrot.lane.b32.xlu2 %v1833_v6, %s2324_s19 }
 0x293   : > { %v1722_v32 = vmul.f32 %v1693_v34, %v3078_v11 }
 0x294   : > { %v1820_v18 = vpop.permute.xlu2 %1819 }
 0x295   : > { %v1834_v49 = vmul.f32 %v3196_v53, %v1722_v32 }
 0x297   : > { %1878 = vrot.lane.b32.xlu1 %v1834_v49, %s2324_s19 }
 0x299   : > { %1880 = vrot.lane.b32.xlu0 %v1835_v38, %s2324_s19  ;;  %v1663_v5 = vpop.permute.xlu1 %1662 }
 0x29a   : > { %1864 = vrot.lane.b32.xlu2 %v1827_v0, %s2324_s19  ;;  %v1716_v8 = vmul.f32 %v1663_v5, %v3099_v15 }
 0x29c   : > { %v1828_v43 = vmul.f32 %v3190_v31, %v1716_v8 }
 0x29f   : > { %1866 = vrot.lane.b32.xlu1 %v1828_v43, %s2324_s19 }
 0x2a1   : > { %v1703_v9 = vpop.permute.xlu1 %1702 }
 0x2a2   : > { %v1724_v20 = vmul.f32 %v1703_v9, %v3142_v30 }
 0x2a4   : > { %v1708_v53 = vpop.permute.xlu0 %1707  ;;  %v1836_v31 = vmul.f32 %v3176_v2, %v1724_v20 }
 0x2a5   : > { %v1725_v7 = vmul.f32 %v1708_v53, %v3156_v35 }
 0x2a7   : > { %v1837_v44 = vmul.f32 %v1820_v18, %v1725_v7 }
 0x2a9   : > { %v1673_v57 = vpop.permute.xlu1 %1672  ;;  %1884 = vrot.lane.b32.xlu1 %v1837_v44, %s2324_s19 }
 0x2aa   : > { %v1718_v58 = vmul.f32 %v1673_v57, %v3152_v23 }
 0x2ac   : > { %v1830_v3 = vmul.f32 %v3168_v24, %v1718_v58 }
 0x2ae   : > { %1870 = vrot.lane.b32.xlu2 %v1830_v3, %s2324_s19 }
 0x2b6   : > { %1882 = vrot.lane.b32.xlu2 %v1836_v31, %s2324_s19 }
 0x2c3   : > { %v1857_v24 = vpop.permute.xlu0 %1856 }
 0x2c4   : > { %v1903_v59 = vsel %vm804_vm6, %v2827_v60, %v1857_v24 }
 0x2c5   : > { %1920 = vst.msk [vmem:[%s3385_s22 + $0x8] sm:$0xff] %vm1918_vm15, %v1903_v59 }
 0x2c9   : > { %v1859_v2 = vpop.permute.xlu2 %1858 }
 0x2ca   : > { %v1904_v63 = vsel %vm804_vm6, %v2846_v36, %v1859_v2 }
 0x2cb   : > { %1921 = vst.msk [vmem:[%s3385_s22 + $0x10] sm:$0xff] %vm1918_vm15, %v1904_v63 }
 0x2d1   : > { %v1855_v56 = vpop.permute.xlu1 %1854 }
 0x2d2   : > { %v1902_v4 = vsel %vm804_vm6, %v2803_v50, %v1855_v56 }
 0x2d3   : > { %1919 = vst.msk [vmem:[%s3385_s22] sm:$0xff] %vm1918_vm15, %v1902_v4 }
 0x2e7   : > { %v1875_v46 = vpop.permute.xlu0 %1874 }
 0x2e8   : > { %v1912_v60 = vsel %vm804_vm6, %v2979_v16, %v1875_v46 }
 0x2e9   : > { %v1873_v55 = vpop.permute.xlu1 %1872  ;;  %1929 = vst.msk [vmem:[%s3385_s22 + $0x50] sm:$0xff] %vm1918_vm15, %v1912_v60 }
 0x2ea   : > { %v1911_v19 = vsel %vm804_vm6, %v2858_v51, %v1873_v55 }
 0x2eb   : > { %1928 = vst.msk [vmem:[%s3385_s22 + $0x48] sm:$0xff] %vm1918_vm15, %v1911_v19 }
 0x2ec   : > { %v1877_v36 = vpop.permute.xlu2 %1876 }
 0x2ed   : > { %v1913_v50 = vsel %vm804_vm6, %v3004_v37, %v1877_v36 }
 0x2ee   : > { %1930 = vst.msk [vmem:[%s3385_s22 + $0x58] sm:$0xff] %vm1918_vm15, %v1913_v50 }
 0x2f1   : > { %v1861_v27 = vpop.permute.xlu1 %1860 }
 0x2f2   : > { %v1905_v54 = vsel %vm804_vm6, %v2899_v22, %v1861_v27 }
 0x2f3   : > { %1922 = vst.msk [vmem:[%s3385_s22 + $0x18] sm:$0xff] %vm1918_vm15, %v1905_v54 }
 0x2f4   : > { %v1865_v51 = vpop.permute.xlu2 %1864 }
 0x2f5   : > { %v1907_v16 = vsel %vm804_vm6, %v3085_v17, %v1865_v51 }
 0x2f6   : > { %1924 = vst.msk [vmem:[%s3385_s22 + $0x28] sm:$0xff] %vm1918_vm15, %v1907_v16 }
 0x2fa   : > { %v1863_v28 = vpop.permute.xlu0 %1862 }
 0x2fb   : > { %v1906_v37 = vsel %vm804_vm6, %v2972_v29, %v1863_v28 }
 0x2fc   : > { %1923 = vst.msk [vmem:[%s3385_s22 + $0x20] sm:$0xff] %vm1918_vm15, %v1906_v37 }
 0x303   : > { %v1869_v13 = vpop.permute.xlu0 %1868 }
 0x304   : > { %v1909_v22 = vsel %vm804_vm6, %v3128_v10, %v1869_v13 }
 0x305   : > { %1926 = vst.msk [vmem:[%s3385_s22 + $0x38] sm:$0xff] %vm1918_vm15, %v1909_v22 }
 0x308   : > { %v1871_v26 = vpop.permute.xlu2 %1870 }
 0x309   : > { %v1879_v48 = vpop.permute.xlu1 %1878  ;;  %v1910_v17 = vsel %vm804_vm6, %v3152_v23, %v1871_v26 }
 0x30a   : > { %v1914_v62 = vsel %vm804_vm6, %v3078_v11, %v1879_v48  ;;  %1927 = vst.msk [vmem:[%s3385_s22 + $0x40] sm:$0xff] %vm1918_vm15, %v1910_v17 }
 0x30b   : > { %v1881_v29 = vpop.permute.xlu0 %1880  ;;  %1931 = vst.msk [vmem:[%s3385_s22 + $0x60] sm:$0xff] %vm1918_vm15, %v1914_v62 }
 0x30c   : > { %v1915_v10 = vsel %vm804_vm6, %v3088_v40, %v1881_v29 }
 0x30d   : > { %1932 = vst.msk [vmem:[%s3385_s22 + $0x68] sm:$0xff] %vm1918_vm15, %v1915_v10 }
 0x310   : > { %v1883_v39 = vpop.permute.xlu2 %1882 }
 0x311   : > { %v1867_v47 = vpop.permute.xlu1 %1866  ;;  %v1916_v33 = vsel %vm804_vm6, %v3142_v30, %v1883_v39 }
 0x312   : > { %v1908_v23 = vsel %vm804_vm6, %v3099_v15, %v1867_v47  ;;  %1933 = vst.msk [vmem:[%s3385_s22 + $0x70] sm:$0xff] %vm1918_vm15, %v1916_v33 }
 0x313   : > { %1925 = vst.msk [vmem:[%s3385_s22 + $0x30] sm:$0xff] %vm1918_vm15, %v1908_v23 }
 0x31b   : > { %v1885_v11 = vpop.permute.xlu1 %1884 }
 0x31c   : > { %v1917_v45 = vsel %vm804_vm6, %v3156_v35, %v1885_v11 }
 0x31d   : > { %1934 = vst.msk [vmem:[%s3385_s22 + $0x78] sm:$0xff] %vm1918_vm15, %v1917_v45 }
 0x31e PF: > { %s20_s29 = sadd.s32 1, %s2321_s29  }
 0x31f   : > { %p17_p4 = scmp.ge.s32.totalorder %s20_s29, 5  }
 0x321   :  { %19 = sbr.rel (!%p17_p4) target bundleno = 3 (0x3), region = 85 }

</bundles_post_ra>
